<compile_context>
chip_gen: v5e
topology: v5e:2x2
jax: 0.10.0
libtpu: 0.0.40
codegen_flags: <defaults>
</compile_context>

<pallas_src>
import functools

import jax
import jax.numpy as jnp
from jax import lax
from jax.experimental import pallas as pl
from jax.experimental.pallas import tpu as pltpu


IGNORE_MAIN = 255   # nn.CrossEntropyLoss(ignore_index=255, reduction='mean')
IGNORE_ROI = 0      # CrossEntropyLoss2dPixelWiseWeighted(ignore_index=0)


def _ce_strip(logit_rows, lab, ignore_index):
    """Per-pixel cross entropy on (sub, W) strips; returns (loss, valid_f32)."""
    m = logit_rows[0]
    for r in logit_rows[1:]:
        m = jnp.maximum(m, r)
    se = jnp.zeros_like(m)
    for r in logit_rows:
        se = se + jnp.exp(r - m)
    lse = jnp.log(se) + m
    picked = jnp.zeros_like(m)
    for c, r in enumerate(logit_rows):
        picked = jnp.where(lab == c, r, picked)
    valid = lab != ignore_index
    loss = jnp.where(valid, lse - picked, 0.0)
    return loss, valid.astype(jnp.float32)


def _criterion_kernel(pred_ref, label_ref, pred_roi_ref, label_roi_ref,
                      pred_fin_ref, pw_ref, out_ref, *,
                      num_classes, num_w_ch, sub_rows, num_strips):
    W = out_ref.shape[-1]

    def body(i, carry):
        s1, c1, s3, c3, s2 = carry
        r0 = pl.multiple_of(i * sub_rows, sub_rows)
        sl = pl.ds(r0, sub_rows)

        lab = label_ref[0, sl, :].astype(jnp.int32)          # (sub, W)
        lab_roi = label_roi_ref[0, sl, :].astype(jnp.int32)

        pred_rows = [pred_ref[0, c, sl, :].astype(jnp.float32)
                     for c in range(num_classes)]
        fin_rows = [pred_fin_ref[0, c, sl, :].astype(jnp.float32)
                    for c in range(num_classes)]
        roi_rows = [pred_roi_ref[0, c, sl, :].astype(jnp.float32)
                    for c in range(num_classes)]

        l1, v1 = _ce_strip(pred_rows, lab, IGNORE_MAIN)
        l3, v3 = _ce_strip(fin_rows, lab, IGNORE_MAIN)
        l2, _ = _ce_strip(roi_rows, lab_roi, IGNORE_ROI)

        # pixel_weight: max over channel dim, then cube (torch.max(dim=1) -> pow 3)
        w = pw_ref[0, 0, sl, :].astype(jnp.float32)
        for c in range(1, num_w_ch):
            w = jnp.maximum(w, pw_ref[0, c, sl, :].astype(jnp.float32))
        l2w = l2 * (w * w * w)

        return (s1 + jnp.sum(l1, axis=0, keepdims=True),
                c1 + jnp.sum(v1, axis=0, keepdims=True),
                s3 + jnp.sum(l3, axis=0, keepdims=True),
                c3 + jnp.sum(v3, axis=0, keepdims=True),
                s2 + jnp.sum(l2w, axis=0, keepdims=True))

    zero = jnp.zeros((1, W), jnp.float32)
    s1, c1, s3, c3, s2 = lax.fori_loop(
        0, num_strips, body, (zero, zero, zero, zero, zero))

    # Direct per-row stat writes; rows 5..7 are padding (zeroed for determinism).
    out_ref[0, 0, 0:1, :] = s1
    out_ref[0, 0, 1:2, :] = c1
    out_ref[0, 0, 2:3, :] = s3
    out_ref[0, 0, 3:4, :] = c3
    out_ref[0, 0, 4:5, :] = s2
    out_ref[0, 0, 5:8, :] = jnp.zeros((3, W), jnp.float32)


def _vmem_capacity_bytes():
    try:
        info = pltpu.get_tpu_info()
        return int(getattr(info, "vmem_capacity_bytes", 64 << 20))
    except Exception:
        return 64 << 20   # conservative fallback (v7x per-TC size)


def _pick_tile_h(H, W, bytes_per_pixel, budget):
    """Largest tH dividing H, multiple of 8, with single-buffer bytes <= budget."""
    if H % 8 != 0:
        return H          # full-H block is always legal (block dim == array dim)
    best = 8
    th = 8
    while th <= H:
        if H % th == 0 and th * W * bytes_per_pixel <= budget:
            best = th
        th += 8
    return best


def criterion_ce(prediction, class_label, prediction_roi, class_label_roi,
                 prediction_fin, pixel_weight, *, tile_h=None):
    N, C, H, W = prediction.shape
    Cw = pixel_weight.shape[1]

    # HBM bytes per pixel per step (drives tile sizing on this mem-bound kernel).
    bpp = ((prediction.dtype.itemsize + prediction_roi.dtype.itemsize
            + prediction_fin.dtype.itemsize) * C
           + pixel_weight.dtype.itemsize * Cw
           + class_label.dtype.itemsize + class_label_roi.dtype.itemsize)

    vmem_cap = _vmem_capacity_bytes()
    if tile_h is None:
        # keep the double-buffered working set around ~1/4 of physical VMEM
        tile_h = _pick_tile_h(H, W, bpp, vmem_cap // 8)
    assert H % tile_h == 0 and (tile_h % 8 == 0 or tile_h == H)
    n_h = H // tile_h

    if tile_h % 16 == 0:
        sub = 16          # bf16-friendly sublane strip
    elif tile_h % 8 == 0:
        sub = 8
    else:
        sub = tile_h
    num_strips = tile_h // sub

    kernel = functools.partial(_criterion_kernel, num_classes=C, num_w_ch=Cw,
                               sub_rows=sub, num_strips=num_strips)

    total_px = N * H * W
    bytes_in = sum(int(x.size) * x.dtype.itemsize for x in
                   (prediction, class_label, prediction_roi, class_label_roi,
                    prediction_fin, pixel_weight))
    bytes_out = N * n_h * 8 * W * 4
    cost = pl.CostEstimate(
        flops=(18 * C + 18 + Cw + 4) * total_px,
        transcendentals=3 * (C + 1) * total_px,
        bytes_accessed=bytes_in + bytes_out)

    stats = pl.pallas_call(
        kernel,
        out_shape=jax.ShapeDtypeStruct((N, n_h, 8, W), jnp.float32),
        grid_spec=pltpu.PrefetchScalarGridSpec(
            num_scalar_prefetch=0,
            grid=(N, n_h),
            in_specs=[
                pl.BlockSpec((1, C, tile_h, W), lambda b, h: (b, 0, h, 0)),
                pl.BlockSpec((1, tile_h, W), lambda b, h: (b, h, 0)),
                pl.BlockSpec((1, C, tile_h, W), lambda b, h: (b, 0, h, 0)),
                pl.BlockSpec((1, tile_h, W), lambda b, h: (b, h, 0)),
                pl.BlockSpec((1, C, tile_h, W), lambda b, h: (b, 0, h, 0)),
                pl.BlockSpec((1, Cw, tile_h, W), lambda b, h: (b, 0, h, 0)),
            ],
            out_specs=pl.BlockSpec((1, 1, 8, W), lambda b, h: (b, h, 0, 0)),
        ),
        compiler_params=pltpu.CompilerParams(
            dimension_semantics=("parallel", "parallel"),
            vmem_limit_bytes=min(64 << 20, vmem_cap // 2)),
        cost_estimate=cost,
    )(prediction, class_label, prediction_roi, class_label_roi,
      prediction_fin, pixel_weight)

    per_b = jnp.sum(stats[:, :, :5, :], axis=(1, 3))      # (N, 5)
    sum1, cnt1 = per_b[:, 0], per_b[:, 1]
    sum3, cnt3 = per_b[:, 2], per_b[:, 3]
    sum2 = jnp.sum(per_b[:, 4])

    # NOTE: if a batch element has zero non-ignored pixels this is NaN, matching the
    # reference / PyTorch mean-with-everything-ignored behaviour.
    ce1 = sum1 / cnt1
    ce3 = sum3 / cnt3
    ce2 = sum2 / (N * H * W)                               # plain mean over ALL elements
    return jnp.sum(ce1 + ce3) + ce2


# ----------------------------- pure-JAX reference -----------------------------
def _ref_ce_map(logits, labels, ignore_index):
    logp = jax.nn.log_softmax(logits.astype(jnp.float32), axis=1)
    safe = jnp.clip(labels, 0, logits.shape[1] - 1)
    picked = jnp.take_along_axis(logp, safe[:, None], axis=1)[:, 0]
    valid = labels != ignore_index
    return jnp.where(valid, -picked, 0.0), valid.astype(jnp.float32)


def criterion_ce_ref(prediction, class_label, prediction_roi, class_label_roi,
                     prediction_fin, pixel_weight):
    l1, v1 = _ref_ce_map(prediction, class_label, IGNORE_MAIN)
    l3, v3 = _ref_ce_map(prediction_fin, class_label, IGNORE_MAIN)
    l2, _ = _ref_ce_map(prediction_roi, class_label_roi, IGNORE_ROI)
    w3 = jnp.max(pixel_weight.astype(jnp.float32), axis=1) ** 3
    ce1 = jnp.sum(l1, axis=(1, 2)) / jnp.sum(v1, axis=(1, 2))
    ce3 = jnp.sum(l3, axis=(1, 2)) / jnp.sum(v3, axis=(1, 2))
    ce2 = jnp.mean(l2 * w3)
    return jnp.sum(ce1 + ce3) + ce2


if __name__ == "__main__":
    key = jax.random.PRNGKey(0)
    k1, k2, k3, k4, k5, k6, k7 = jax.random.split(key, 7)

    N, C, H, W = 2, 3, 32, 256  # small version of the module's (N, 3, 512, 512)

    prediction = jax.random.normal(k1, (N, C, H, W), jnp.float32)
    prediction_roi = jax.random.normal(k2, (N, C, H, W), jnp.float32)
    prediction_fin = jax.random.normal(k3, (N, C, H, W), jnp.float32)
    pixel_weight = jax.random.uniform(k4, (N, C, H, W), jnp.float32)

    class_label = jax.random.randint(k5, (N, H, W), 0, C).astype(jnp.int32)
    # sprinkle some ignore_index=255 pixels
    class_label = jnp.where(jax.random.uniform(k6, (N, H, W)) < 0.1,
                            jnp.int32(255), class_label)
    class_label_roi = jax.random.randint(k7, (N, H, W), 0, C).astype(jnp.int32)

    # ---- f32 path, auto-chosen H tile ----
    loss = criterion_ce(prediction, class_label, prediction_roi,
                        class_label_roi, prediction_fin, pixel_weight)
    loss = jax.block_until_ready(loss)
    ref = criterion_ce_ref(prediction, class_label, prediction_roi,
                           class_label_roi, prediction_fin, pixel_weight)
    assert jnp.allclose(loss, ref, rtol=1e-4, atol=1e-4), (loss, ref)

    # ---- bf16 logits/weights (halves HBM traffic) + multi-tile H grid ----
    pred_bf = prediction.astype(jnp.bfloat16)
    roi_bf = prediction_roi.astype(jnp.bfloat16)
    fin_bf = prediction_fin.astype(jnp.bfloat16)
    pw_bf = pixel_weight.astype(jnp.bfloat16)
    loss_bf = criterion_ce(pred_bf, class_label, roi_bf, class_label_roi,
                           fin_bf, pw_bf, tile_h=16)
    loss_bf = jax.block_until_ready(loss_bf)
    ref_bf = criterion_ce_ref(pred_bf.astype(jnp.float32), class_label,
                              roi_bf.astype(jnp.float32), class_label_roi,
                              fin_bf.astype(jnp.float32),
                              pw_bf.astype(jnp.float32))
    assert jnp.allclose(loss_bf, ref_bf, rtol=1e-3, atol=1e-3), (loss_bf, ref_bf)

    print("KERNEL_OK")
</pallas_src>

<mosaic_0001>
module attributes {stable_mosaic.version = 11 : i64} {
  func.func @_criterion_kernel(%arg0: i32, %arg1: i32, %arg2: memref<1x3x32x256xf32, #tpu.memory_space<vmem>>, %arg3: memref<1x32x256xi32, #tpu.memory_space<vmem>>, %arg4: memref<1x3x32x256xf32, #tpu.memory_space<vmem>>, %arg5: memref<1x32x256xi32, #tpu.memory_space<vmem>>, %arg6: memref<1x3x32x256xf32, #tpu.memory_space<vmem>>, %arg7: memref<1x3x32x256xf32, #tpu.memory_space<vmem>>, %arg8: memref<1x1x8x256xf32, #tpu.memory_space<vmem>>) attributes {dimension_semantics = [#tpu.dimension_semantics<parallel>, #tpu.dimension_semantics<parallel>], iteration_bounds = array<i64: 2, 1>, scalar_prefetch = 0 : i64, scratch_operands = 0 : i64, tpu.core_type = #tpu.core_type<tc>, window_params = [{transform_indices = @transform_0, window_bounds = array<i64: 1, 3, 32, 256>}, {transform_indices = @transform_1, window_bounds = array<i64: 1, 32, 256>}, {transform_indices = @transform_2, window_bounds = array<i64: 1, 3, 32, 256>}, {transform_indices = @transform_3, window_bounds = array<i64: 1, 32, 256>}, {transform_indices = @transform_4, window_bounds = array<i64: 1, 3, 32, 256>}, {transform_indices = @transform_5, window_bounds = array<i64: 1, 3, 32, 256>}, {transform_indices = @transform_6, window_bounds = array<i64: 1, 1, 8, 256>}]} {
    %cst = arith.constant 0.000000e+00 : f32
    %0 = vector.broadcast %cst : f32 to vector<1x256xf32>
    %c0_i32 = arith.constant 0 : i32
    %c2_i32 = arith.constant 2 : i32
    %1 = arith.addi %c0_i32, %c2_i32 : i32
    %c1_i32 = arith.constant 1 : i32
    %2:5 = scf.for %arg9 = %c0_i32 to %1 step %c1_i32 iter_args(%arg10 = %0, %arg11 = %0, %arg12 = %0, %arg13 = %0, %arg14 = %0) -> (vector<1x256xf32>, vector<1x256xf32>, vector<1x256xf32>, vector<1x256xf32>, vector<1x256xf32>)  : i32 {
      %c16_i32 = arith.constant 16 : i32
      %22 = arith.muli %arg9, %c16_i32 : i32
      %23 = tpu.assume_multiple %22, 16 : i32
      %c0_20 = arith.constant 0 : index
      %24 = arith.index_cast %23 : i32 to index
      %c0_21 = arith.constant 0 : index
      %25 = vector.load %arg3[%c0_20, %24, %c0_21] : memref<1x32x256xi32, #tpu.memory_space<vmem>>, vector<1x16x256xi32>
      %26 = vector.shape_cast %25 : vector<1x16x256xi32> to vector<16x256xi32>
      %c0_22 = arith.constant 0 : index
      %27 = arith.index_cast %23 : i32 to index
      %c0_23 = arith.constant 0 : index
      %28 = vector.load %arg5[%c0_22, %27, %c0_23] : memref<1x32x256xi32, #tpu.memory_space<vmem>>, vector<1x16x256xi32>
      %29 = vector.shape_cast %28 : vector<1x16x256xi32> to vector<16x256xi32>
      %c0_24 = arith.constant 0 : index
      %c0_25 = arith.constant 0 : index
      %30 = arith.index_cast %23 : i32 to index
      %c0_26 = arith.constant 0 : index
      %31 = vector.load %arg2[%c0_24, %c0_25, %30, %c0_26] : memref<1x3x32x256xf32, #tpu.memory_space<vmem>>, vector<1x1x16x256xf32>
      %32 = vector.shape_cast %31 : vector<1x1x16x256xf32> to vector<16x256xf32>
      %c0_27 = arith.constant 0 : index
      %c1_28 = arith.constant 1 : index
      %33 = arith.index_cast %23 : i32 to index
      %c0_29 = arith.constant 0 : index
      %34 = vector.load %arg2[%c0_27, %c1_28, %33, %c0_29] : memref<1x3x32x256xf32, #tpu.memory_space<vmem>>, vector<1x1x16x256xf32>
      %35 = vector.shape_cast %34 : vector<1x1x16x256xf32> to vector<16x256xf32>
      %c0_30 = arith.constant 0 : index
      %c2_31 = arith.constant 2 : index
      %36 = arith.index_cast %23 : i32 to index
      %c0_32 = arith.constant 0 : index
      %37 = vector.load %arg2[%c0_30, %c2_31, %36, %c0_32] : memref<1x3x32x256xf32, #tpu.memory_space<vmem>>, vector<1x1x16x256xf32>
      %38 = vector.shape_cast %37 : vector<1x1x16x256xf32> to vector<16x256xf32>
      %c0_33 = arith.constant 0 : index
      %c0_34 = arith.constant 0 : index
      %39 = arith.index_cast %23 : i32 to index
      %c0_35 = arith.constant 0 : index
      %40 = vector.load %arg6[%c0_33, %c0_34, %39, %c0_35] : memref<1x3x32x256xf32, #tpu.memory_space<vmem>>, vector<1x1x16x256xf32>
      %41 = vector.shape_cast %40 : vector<1x1x16x256xf32> to vector<16x256xf32>
      %c0_36 = arith.constant 0 : index
      %c1_37 = arith.constant 1 : index
      %42 = arith.index_cast %23 : i32 to index
      %c0_38 = arith.constant 0 : index
      %43 = vector.load %arg6[%c0_36, %c1_37, %42, %c0_38] : memref<1x3x32x256xf32, #tpu.memory_space<vmem>>, vector<1x1x16x256xf32>
      %44 = vector.shape_cast %43 : vector<1x1x16x256xf32> to vector<16x256xf32>
      %c0_39 = arith.constant 0 : index
      %c2_40 = arith.constant 2 : index
      %45 = arith.index_cast %23 : i32 to index
      %c0_41 = arith.constant 0 : index
      %46 = vector.load %arg6[%c0_39, %c2_40, %45, %c0_41] : memref<1x3x32x256xf32, #tpu.memory_space<vmem>>, vector<1x1x16x256xf32>
      %47 = vector.shape_cast %46 : vector<1x1x16x256xf32> to vector<16x256xf32>
      %c0_42 = arith.constant 0 : index
      %c0_43 = arith.constant 0 : index
      %48 = arith.index_cast %23 : i32 to index
      %c0_44 = arith.constant 0 : index
      %49 = vector.load %arg4[%c0_42, %c0_43, %48, %c0_44] : memref<1x3x32x256xf32, #tpu.memory_space<vmem>>, vector<1x1x16x256xf32>
      %50 = vector.shape_cast %49 : vector<1x1x16x256xf32> to vector<16x256xf32>
      %c0_45 = arith.constant 0 : index
      %c1_46 = arith.constant 1 : index
      %51 = arith.index_cast %23 : i32 to index
      %c0_47 = arith.constant 0 : index
      %52 = vector.load %arg4[%c0_45, %c1_46, %51, %c0_47] : memref<1x3x32x256xf32, #tpu.memory_space<vmem>>, vector<1x1x16x256xf32>
      %53 = vector.shape_cast %52 : vector<1x1x16x256xf32> to vector<16x256xf32>
      %c0_48 = arith.constant 0 : index
      %c2_49 = arith.constant 2 : index
      %54 = arith.index_cast %23 : i32 to index
      %c0_50 = arith.constant 0 : index
      %55 = vector.load %arg4[%c0_48, %c2_49, %54, %c0_50] : memref<1x3x32x256xf32, #tpu.memory_space<vmem>>, vector<1x1x16x256xf32>
      %56 = vector.shape_cast %55 : vector<1x1x16x256xf32> to vector<16x256xf32>
      %57 = arith.maximumf %32, %35 : vector<16x256xf32>
      %58 = arith.maximumf %57, %38 : vector<16x256xf32>
      %cst_51 = arith.constant 0.000000e+00 : f32
      %59 = vector.broadcast %cst_51 : f32 to vector<16x256xf32>
      %60 = arith.subf %32, %58 : vector<16x256xf32>
      %61 = math.exp %60 : vector<16x256xf32>
      %62 = arith.addf %59, %61 : vector<16x256xf32>
      %63 = arith.subf %35, %58 : vector<16x256xf32>
      %64 = math.exp %63 : vector<16x256xf32>
      %65 = arith.addf %62, %64 : vector<16x256xf32>
      %66 = arith.subf %38, %58 : vector<16x256xf32>
      %67 = math.exp %66 : vector<16x256xf32>
      %68 = arith.addf %65, %67 : vector<16x256xf32>
      %69 = math.log %68 : vector<16x256xf32>
      %70 = arith.addf %69, %58 : vector<16x256xf32>
      %cst_52 = arith.constant 0.000000e+00 : f32
      %71 = vector.broadcast %cst_52 : f32 to vector<16x256xf32>
      %c0_i32_53 = arith.constant 0 : i32
      %72 = vector.broadcast %c0_i32_53 : i32 to vector<16x256xi32>
      %73 = arith.cmpi eq, %26, %72 : vector<16x256xi32>
      %74 = arith.select %73, %32, %71 : vector<16x256xi1>, vector<16x256xf32>
      %c1_i32_54 = arith.constant 1 : i32
      %75 = vector.broadcast %c1_i32_54 : i32 to vector<16x256xi32>
      %76 = arith.cmpi eq, %26, %75 : vector<16x256xi32>
      %77 = arith.select %76, %35, %74 : vector<16x256xi1>, vector<16x256xf32>
      %c2_i32_55 = arith.constant 2 : i32
      %78 = vector.broadcast %c2_i32_55 : i32 to vector<16x256xi32>
      %79 = arith.cmpi eq, %26, %78 : vector<16x256xi32>
      %80 = arith.select %79, %38, %77 : vector<16x256xi1>, vector<16x256xf32>
      %c255_i32 = arith.constant 255 : i32
      %81 = vector.broadcast %c255_i32 : i32 to vector<16x256xi32>
      %82 = arith.cmpi ne, %26, %81 : vector<16x256xi32>
      %83 = arith.subf %70, %80 : vector<16x256xf32>
      %cst_56 = arith.constant 0.000000e+00 : f32
      %84 = vector.broadcast %cst_56 : f32 to vector<16x256xf32>
      %85 = arith.select %82, %83, %84 : vector<16x256xi1>, vector<16x256xf32>
      %86 = arith.extui %82 : vector<16x256xi1> to vector<16x256xi32>
      %87 = arith.sitofp %86 : vector<16x256xi32> to vector<16x256xf32>
      %88 = arith.maximumf %41, %44 : vector<16x256xf32>
      %89 = arith.maximumf %88, %47 : vector<16x256xf32>
      %cst_57 = arith.constant 0.000000e+00 : f32
      %90 = vector.broadcast %cst_57 : f32 to vector<16x256xf32>
      %91 = arith.subf %41, %89 : vector<16x256xf32>
      %92 = math.exp %91 : vector<16x256xf32>
      %93 = arith.addf %90, %92 : vector<16x256xf32>
      %94 = arith.subf %44, %89 : vector<16x256xf32>
      %95 = math.exp %94 : vector<16x256xf32>
      %96 = arith.addf %93, %95 : vector<16x256xf32>
      %97 = arith.subf %47, %89 : vector<16x256xf32>
      %98 = math.exp %97 : vector<16x256xf32>
      %99 = arith.addf %96, %98 : vector<16x256xf32>
      %100 = math.log %99 : vector<16x256xf32>
      %101 = arith.addf %100, %89 : vector<16x256xf32>
      %cst_58 = arith.constant 0.000000e+00 : f32
      %102 = vector.broadcast %cst_58 : f32 to vector<16x256xf32>
      %c0_i32_59 = arith.constant 0 : i32
      %103 = vector.broadcast %c0_i32_59 : i32 to vector<16x256xi32>
      %104 = arith.cmpi eq, %26, %103 : vector<16x256xi32>
      %105 = arith.select %104, %41, %102 : vector<16x256xi1>, vector<16x256xf32>
      %c1_i32_60 = arith.constant 1 : i32
      %106 = vector.broadcast %c1_i32_60 : i32 to vector<16x256xi32>
      %107 = arith.cmpi eq, %26, %106 : vector<16x256xi32>
      %108 = arith.select %107, %44, %105 : vector<16x256xi1>, vector<16x256xf32>
      %c2_i32_61 = arith.constant 2 : i32
      %109 = vector.broadcast %c2_i32_61 : i32 to vector<16x256xi32>
      %110 = arith.cmpi eq, %26, %109 : vector<16x256xi32>
      %111 = arith.select %110, %47, %108 : vector<16x256xi1>, vector<16x256xf32>
      %c255_i32_62 = arith.constant 255 : i32
      %112 = vector.broadcast %c255_i32_62 : i32 to vector<16x256xi32>
      %113 = arith.cmpi ne, %26, %112 : vector<16x256xi32>
      %114 = arith.subf %101, %111 : vector<16x256xf32>
      %cst_63 = arith.constant 0.000000e+00 : f32
      %115 = vector.broadcast %cst_63 : f32 to vector<16x256xf32>
      %116 = arith.select %113, %114, %115 : vector<16x256xi1>, vector<16x256xf32>
      %117 = arith.extui %113 : vector<16x256xi1> to vector<16x256xi32>
      %118 = arith.sitofp %117 : vector<16x256xi32> to vector<16x256xf32>
      %119 = arith.maximumf %50, %53 : vector<16x256xf32>
      %120 = arith.maximumf %119, %56 : vector<16x256xf32>
      %cst_64 = arith.constant 0.000000e+00 : f32
      %121 = vector.broadcast %cst_64 : f32 to vector<16x256xf32>
      %122 = arith.subf %50, %120 : vector<16x256xf32>
      %123 = math.exp %122 : vector<16x256xf32>
      %124 = arith.addf %121, %123 : vector<16x256xf32>
      %125 = arith.subf %53, %120 : vector<16x256xf32>
      %126 = math.exp %125 : vector<16x256xf32>
      %127 = arith.addf %124, %126 : vector<16x256xf32>
      %128 = arith.subf %56, %120 : vector<16x256xf32>
      %129 = math.exp %128 : vector<16x256xf32>
      %130 = arith.addf %127, %129 : vector<16x256xf32>
      %131 = math.log %130 : vector<16x256xf32>
      %132 = arith.addf %131, %120 : vector<16x256xf32>
      %cst_65 = arith.constant 0.000000e+00 : f32
      %133 = vector.broadcast %cst_65 : f32 to vector<16x256xf32>
      %c0_i32_66 = arith.constant 0 : i32
      %134 = vector.broadcast %c0_i32_66 : i32 to vector<16x256xi32>
      %135 = arith.cmpi eq, %29, %134 : vector<16x256xi32>
      %136 = arith.select %135, %50, %133 : vector<16x256xi1>, vector<16x256xf32>
      %c1_i32_67 = arith.constant 1 : i32
      %137 = vector.broadcast %c1_i32_67 : i32 to vector<16x256xi32>
      %138 = arith.cmpi eq, %29, %137 : vector<16x256xi32>
      %139 = arith.select %138, %53, %136 : vector<16x256xi1>, vector<16x256xf32>
      %c2_i32_68 = arith.constant 2 : i32
      %140 = vector.broadcast %c2_i32_68 : i32 to vector<16x256xi32>
      %141 = arith.cmpi eq, %29, %140 : vector<16x256xi32>
      %142 = arith.select %141, %56, %139 : vector<16x256xi1>, vector<16x256xf32>
      %c0_i32_69 = arith.constant 0 : i32
      %143 = vector.broadcast %c0_i32_69 : i32 to vector<16x256xi32>
      %144 = arith.cmpi ne, %29, %143 : vector<16x256xi32>
      %145 = arith.subf %132, %142 : vector<16x256xf32>
      %cst_70 = arith.constant 0.000000e+00 : f32
      %146 = vector.broadcast %cst_70 : f32 to vector<16x256xf32>
      %147 = arith.select %144, %145, %146 : vector<16x256xi1>, vector<16x256xf32>
      %c0_71 = arith.constant 0 : index
      %c0_72 = arith.constant 0 : index
      %148 = arith.index_cast %23 : i32 to index
      %c0_73 = arith.constant 0 : index
      %149 = vector.load %arg7[%c0_71, %c0_72, %148, %c0_73] : memref<1x3x32x256xf32, #tpu.memory_space<vmem>>, vector<1x1x16x256xf32>
      %150 = vector.shape_cast %149 : vector<1x1x16x256xf32> to vector<16x256xf32>
      %c0_74 = arith.constant 0 : index
      %c1_75 = arith.constant 1 : index
      %151 = arith.index_cast %23 : i32 to index
      %c0_76 = arith.constant 0 : index
      %152 = vector.load %arg7[%c0_74, %c1_75, %151, %c0_76] : memref<1x3x32x256xf32, #tpu.memory_space<vmem>>, vector<1x1x16x256xf32>
      %153 = vector.shape_cast %152 : vector<1x1x16x256xf32> to vector<16x256xf32>
      %154 = arith.maximumf %150, %153 : vector<16x256xf32>
      %c0_77 = arith.constant 0 : index
      %c2_78 = arith.constant 2 : index
      %155 = arith.index_cast %23 : i32 to index
      %c0_79 = arith.constant 0 : index
      %156 = vector.load %arg7[%c0_77, %c2_78, %155, %c0_79] : memref<1x3x32x256xf32, #tpu.memory_space<vmem>>, vector<1x1x16x256xf32>
      %157 = vector.shape_cast %156 : vector<1x1x16x256xf32> to vector<16x256xf32>
      %158 = arith.maximumf %154, %157 : vector<16x256xf32>
      %159 = arith.mulf %158, %158 : vector<16x256xf32>
      %160 = arith.mulf %159, %158 : vector<16x256xf32>
      %161 = arith.mulf %147, %160 : vector<16x256xf32>
      %cst_80 = arith.constant dense<0.000000e+00> : vector<256xf32>
      %162 = vector.multi_reduction <add>, %85, %cst_80 [0] : vector<16x256xf32> to vector<256xf32>
      %163 = vector.shape_cast %162 : vector<256xf32> to vector<1x256xf32>
      %164 = arith.addf %arg10, %163 : vector<1x256xf32>
      %cst_81 = arith.constant dense<0.000000e+00> : vector<256xf32>
      %165 = vector.multi_reduction <add>, %87, %cst_81 [0] : vector<16x256xf32> to vector<256xf32>
      %166 = vector.shape_cast %165 : vector<256xf32> to vector<1x256xf32>
      %167 = arith.addf %arg11, %166 : vector<1x256xf32>
      %cst_82 = arith.constant dense<0.000000e+00> : vector<256xf32>
      %168 = vector.multi_reduction <add>, %116, %cst_82 [0] : vector<16x256xf32> to vector<256xf32>
      %169 = vector.shape_cast %168 : vector<256xf32> to vector<1x256xf32>
      %170 = arith.addf %arg12, %169 : vector<1x256xf32>
      %cst_83 = arith.constant dense<0.000000e+00> : vector<256xf32>
      %171 = vector.multi_reduction <add>, %118, %cst_83 [0] : vector<16x256xf32> to vector<256xf32>
      %172 = vector.shape_cast %171 : vector<256xf32> to vector<1x256xf32>
      %173 = arith.addf %arg13, %172 : vector<1x256xf32>
      %cst_84 = arith.constant dense<0.000000e+00> : vector<256xf32>
      %174 = vector.multi_reduction <add>, %161, %cst_84 [0] : vector<16x256xf32> to vector<256xf32>
      %175 = vector.shape_cast %174 : vector<256xf32> to vector<1x256xf32>
      %176 = arith.addf %arg14, %175 : vector<1x256xf32>
      scf.yield %164, %167, %170, %173, %176 : vector<1x256xf32>, vector<1x256xf32>, vector<1x256xf32>, vector<1x256xf32>, vector<1x256xf32>
    }
    %c2_i32_0 = arith.constant 2 : i32
    %c0 = arith.constant 0 : index
    %c0_1 = arith.constant 0 : index
    %c0_2 = arith.constant 0 : index
    %c0_3 = arith.constant 0 : index
    %3 = vector.load %arg8[%c0, %c0_1, %c0_2, %c0_3] : memref<1x1x8x256xf32, #tpu.memory_space<vmem>>, vector<1x1x1x256xf32>
    %4 = vector.shape_cast %3 : vector<1x1x1x256xf32> to vector<1x256xf32>
    %5 = vector.shape_cast %2#0 : vector<1x256xf32> to vector<1x1x1x256xf32>
    tpu.vector_store %arg8[%c0, %c0_1, %c0_2, %c0_3], %5 {strides = array<i32>} : memref<1x1x8x256xf32, #tpu.memory_space<vmem>>, vector<1x1x1x256xf32>,
    %c0_4 = arith.constant 0 : index
    %c0_5 = arith.constant 0 : index
    %c1 = arith.constant 1 : index
    %c0_6 = arith.constant 0 : index
    %6 = vector.load %arg8[%c0_4, %c0_5, %c1, %c0_6] : memref<1x1x8x256xf32, #tpu.memory_space<vmem>>, vector<1x1x1x256xf32>
    %7 = vector.shape_cast %6 : vector<1x1x1x256xf32> to vector<1x256xf32>
    %8 = vector.shape_cast %2#1 : vector<1x256xf32> to vector<1x1x1x256xf32>
    tpu.vector_store %arg8[%c0_4, %c0_5, %c1, %c0_6], %8 {strides = array<i32>} : memref<1x1x8x256xf32, #tpu.memory_space<vmem>>, vector<1x1x1x256xf32>,
    %c0_7 = arith.constant 0 : index
    %c0_8 = arith.constant 0 : index
    %c2 = arith.constant 2 : index
    %c0_9 = arith.constant 0 : index
    %9 = vector.load %arg8[%c0_7, %c0_8, %c2, %c0_9] : memref<1x1x8x256xf32, #tpu.memory_space<vmem>>, vector<1x1x1x256xf32>
    %10 = vector.shape_cast %9 : vector<1x1x1x256xf32> to vector<1x256xf32>
    %11 = vector.shape_cast %2#2 : vector<1x256xf32> to vector<1x1x1x256xf32>
    tpu.vector_store %arg8[%c0_7, %c0_8, %c2, %c0_9], %11 {strides = array<i32>} : memref<1x1x8x256xf32, #tpu.memory_space<vmem>>, vector<1x1x1x256xf32>,
    %c0_10 = arith.constant 0 : index
    %c0_11 = arith.constant 0 : index
    %c3 = arith.constant 3 : index
    %c0_12 = arith.constant 0 : index
    %12 = vector.load %arg8[%c0_10, %c0_11, %c3, %c0_12] : memref<1x1x8x256xf32, #tpu.memory_space<vmem>>, vector<1x1x1x256xf32>
    %13 = vector.shape_cast %12 : vector<1x1x1x256xf32> to vector<1x256xf32>
    %14 = vector.shape_cast %2#3 : vector<1x256xf32> to vector<1x1x1x256xf32>
    tpu.vector_store %arg8[%c0_10, %c0_11, %c3, %c0_12], %14 {strides = array<i32>} : memref<1x1x8x256xf32, #tpu.memory_space<vmem>>, vector<1x1x1x256xf32>,
    %c0_13 = arith.constant 0 : index
    %c0_14 = arith.constant 0 : index
    %c4 = arith.constant 4 : index
    %c0_15 = arith.constant 0 : index
    %15 = vector.load %arg8[%c0_13, %c0_14, %c4, %c0_15] : memref<1x1x8x256xf32, #tpu.memory_space<vmem>>, vector<1x1x1x256xf32>
    %16 = vector.shape_cast %15 : vector<1x1x1x256xf32> to vector<1x256xf32>
    %17 = vector.shape_cast %2#4 : vector<1x256xf32> to vector<1x1x1x256xf32>
    tpu.vector_store %arg8[%c0_13, %c0_14, %c4, %c0_15], %17 {strides = array<i32>} : memref<1x1x8x256xf32, #tpu.memory_space<vmem>>, vector<1x1x1x256xf32>,
    %cst_16 = arith.constant 0.000000e+00 : f32
    %18 = vector.broadcast %cst_16 : f32 to vector<3x256xf32>
    %c0_17 = arith.constant 0 : index
    %c0_18 = arith.constant 0 : index
    %c5 = arith.constant 5 : index
    %c0_19 = arith.constant 0 : index
    %19 = vector.load %arg8[%c0_17, %c0_18, %c5, %c0_19] : memref<1x1x8x256xf32, #tpu.memory_space<vmem>>, vector<1x1x3x256xf32>
    %20 = vector.shape_cast %19 : vector<1x1x3x256xf32> to vector<3x256xf32>
    %21 = vector.shape_cast %18 : vector<3x256xf32> to vector<1x1x3x256xf32>
    tpu.vector_store %arg8[%c0_17, %c0_18, %c5, %c0_19], %21 {strides = array<i32>} : memref<1x1x8x256xf32, #tpu.memory_space<vmem>>, vector<1x1x3x256xf32>,
    return
  }
  func.func @transform_0(%arg0: i32, %arg1: i32) -> (i32, i32, i32, i32) {
    %c0_i32 = arith.constant 0 : i32
    %c0_i32_0 = arith.constant 0 : i32
    %c0_i32_1 = arith.constant 0 : i32
    return %arg0, %c0_i32, %arg1, %c0_i32_0 : i32, i32, i32, i32
  }
  func.func @transform_1(%arg0: i32, %arg1: i32) -> (i32, i32, i32) {
    %c0_i32 = arith.constant 0 : i32
    %c0_i32_0 = arith.constant 0 : i32
    return %arg0, %arg1, %c0_i32 : i32, i32, i32
  }
  func.func @transform_2(%arg0: i32, %arg1: i32) -> (i32, i32, i32, i32) {
    %c0_i32 = arith.constant 0 : i32
    %c0_i32_0 = arith.constant 0 : i32
    %c0_i32_1 = arith.constant 0 : i32
    return %arg0, %c0_i32, %arg1, %c0_i32_0 : i32, i32, i32, i32
  }
  func.func @transform_3(%arg0: i32, %arg1: i32) -> (i32, i32, i32) {
    %c0_i32 = arith.constant 0 : i32
    %c0_i32_0 = arith.constant 0 : i32
    return %arg0, %arg1, %c0_i32 : i32, i32, i32
  }
  func.func @transform_4(%arg0: i32, %arg1: i32) -> (i32, i32, i32, i32) {
    %c0_i32 = arith.constant 0 : i32
    %c0_i32_0 = arith.constant 0 : i32
    %c0_i32_1 = arith.constant 0 : i32
    return %arg0, %c0_i32, %arg1, %c0_i32_0 : i32, i32, i32, i32
  }
  func.func @transform_5(%arg0: i32, %arg1: i32) -> (i32, i32, i32, i32) {
    %c0_i32 = arith.constant 0 : i32
    %c0_i32_0 = arith.constant 0 : i32
    %c0_i32_1 = arith.constant 0 : i32
    return %arg0, %c0_i32, %arg1, %c0_i32_0 : i32, i32, i32, i32
  }
  func.func @transform_6(%arg0: i32, %arg1: i32) -> (i32, i32, i32, i32) {
    %c0_i32 = arith.constant 0 : i32
    %c0_i32_0 = arith.constant 0 : i32
    %c0_i32_1 = arith.constant 0 : i32
    return %arg0, %arg1, %c0_i32, %c0_i32_0 : i32, i32, i32, i32
  }
}

</mosaic_0001>

<bundles_post_ra>
// kernel: tpu_custom_call.1
= control target key start
LH: loop header
LB: loop body
LE: loop exit
PB: predicated region body
PF: predicated region fallthrough
CT: control target
= control target key end

     0   :  { %s2973_s0 = inlined_call_operand.hbm [shape: f32[2,3,32,256], index: 0, kind: input, shape index: {}]   ;;  %s2974_s1 = inlined_call_operand.hbm [shape: s32[2,32,256], index: 1, kind: input, shape index: {}]   ;;  %s2975_s2 = inlined_call_operand.hbm [shape: f32[2,3,32,256], index: 2, kind: input, shape index: {}]   ;;  %s2976_s3 = inlined_call_operand.hbm [shape: s32[2,32,256], index: 3, kind: input, shape index: {}]   ;;  %s2977_s4 = inlined_call_operand.hbm [shape: f32[2,3,32,256], index: 4, kind: input, shape index: {}]   ;;  %s2978_s5 = inlined_call_operand.hbm [shape: f32[2,3,32,256], index: 5, kind: input, shape index: {}]   ;;  %s2979_s6 = inlined_call_operand.hbm [shape: f32[2,1,8,256], index: 6, kind: output, shape index: {}]  }
   0x1   :  { %2986 = sst [smem:[#allocation31_spill]] %s2973_s0 }
   0x2   :  { %2987 = sst [smem:[#allocation32_spill]] %s2974_s1 }
   0x3   :  { %2988 = sst [smem:[#allocation33_spill]] %s2975_s2 }
   0x4   :  { %2989 = sst [smem:[#allocation34_spill]] %s2976_s3 }
   0x5   :  { %11 = vsyncpa [#allocation3], 0 }
   0x6   :  { %13 = vsyncpa [#allocation3 + $0x1], 0 }
   0x7   :  { %14 = vsyncpa [#allocation6], 0 }
   0x8   :  { %16 = vsyncpa [#allocation6 + $0x1], 0 }
   0x9   :  { %17 = vsyncpa [#allocation9], 0 }
   0xa   :  { %19 = vsyncpa [#allocation9 + $0x1], 0 }
   0xb   :  { %20 = vsyncpa [#allocation12], 0 }
   0xc   :  { %22 = vsyncpa [#allocation12 + $0x1], 0 }
   0xd   :  { %23 = vsyncpa [#allocation4], 0 }
   0xe   :  { %25 = vsyncpa [#allocation4 + $0x1], 0  ;;  %s2133_s21 = smov 0   ;;  %s2135_s22 = smov 0  }
   0xf   :  { %s2137_s23 = smov 0   ;;  %s2139_s24 = smov 0  }
  0x10   :  { %s2141_s25 = smov 0   ;;  %s2143_s26 = smov 0  }
  0x11 LB: > { %2990 = sst [smem:[#allocation19_spill]] %s2036_s21  ;;  %s2164_s27 = sadd.s32 4294967295, %s2056_s26   ;;  %s2056_s26 = sphi %s2143_s26, %s31_s26   ;;  %s2052_s25 = sphi %s2141_s25, %s3036_s25   ;;  %s2048_s24 = sphi %s2139_s24, %s3035_s24   ;;  %s2044_s23 = sphi %s2137_s23, %s3031_s23   ;;  %s2040_s22 = sphi %s2135_s22, %s3034_s22   ;;  %s2036_s21 = sphi %s2133_s21, %s3033_s21  }
  0x12   : > { %2991 = sst [smem:[#allocation20_spill]] %s2044_s23  ;;  %s1375_s28 = sadd.s32 4294967294, %s2056_s26  }
  0x13   : > { %2992 = sst [smem:[#allocation21_spill]] %s2056_s26  ;;  %s43_s29 = sadd.s32 1, %s2052_s25 }
  0x14   : > { %s52_s30 = sadd.s32 1, %s2044_s23  ;;  %p45_p0 = scmp.ge.s32.totalorder %s43_s29, 2 }
  0x15   : > { %p59_p1 = scmp.ne.s32.totalorder %s2044_s23, %s2040_s22  ;;  %p60_p2 = scmp.eq.s32.totalorder %s2056_s26, 0 }
  0x16   : > { %p65_p3 = scmp.ne.s32.totalorder %s2040_s22, %s2036_s21  ;;  %s3038_s29 = smov (%p45_p0, %s43_s29), 0 }
  0x17   : > { %2993 = sst [smem:[#allocation22_spill]] %s3038_s29  ;;  %p2176_p4 = por %p60_p2, %p59_p1 }
  0x18   : > { %p66_p5 = scmp.eq.s32.totalorder %s2164_s27, 0  ;;  %s47_s8 = ssub.s32 %s2052_s25, %s3038_s29 }
  0x19   : > { %p231_p6 = scmp.eq.s32.totalorder %s2164_s27, 1  ;;  %p50_p7 = scmp.eq.s32.totalorder %s47_s8, 0 }
  0x1a   : > { %p2184_p8 = por %p66_p5, %p65_p3  ;;  %p237_p10 = scmp.eq.s32.totalorder %s1375_s28, 1 }
  0x1b   : > { %p2188_p9 = por %p231_p6, %p59_p1  ;;  %p1377_p12 = scmp.ge.s32.totalorder %s2056_s26, 2 }
  0x1c   : > { %s2193_s11 = scalar_select %p50_p7, %s2044_s23, %s52_s30  }
  0x1d   : > { %p2195_p11 = por %p237_p10, %p65_p3  ;;  %p1524_p13 = scmp.lt.s32.totalorder %s2056_s26, 2 }
  0x1e   : > { %2997 = sst [smem:[#allocation23_spill]] %s2193_s11  ;;  %s2202_s13 = sand.u32 1, %s2044_s23  }
  0x1f   : > { %s2998_s12 = scalar_select %p2195_p11, 1, 0 }
  0x20   : > { %p2206_p0 = pnand %p1524_p13, %p2176_p4  ;;  %s282_s15 = sand.u32 1, %s2056_s26  }
  0x21   : > { %2999 = sst [smem:[#allocation24_spill]] %s2998_s12  ;;  %s1379_s16 = sshll.u32 %s2202_s13, 6 }
  0x22   : > { %s1461_s17 = sshll.u32 %s2052_s25, 6  ;;  %s286_s18 = scalar_lea.vmem [#allocation5], %s1379_s16 }
  0x23   : > { %s297_s19 = sshll.u32 %s286_s18, 4  ;;  %s3001_s1 = sld [smem:[#allocation32_spill]]  ;;  %s298_s19 = int_to_ptr.vmem [resolvable:$true] %s297_s19 }
  0x24   : > { %p1388_p1 = scmp.ge.s32.totalorder %s2056_s26, 1  ;;  %p405_p2 = scmp.lt.s32.totalorder %s2056_s26, 3 }
  0x25   : > { %s2218_s7 = scalar_lea.sflag [#allocation6], %s282_s15  ;;  %s2094_s29 = smov 256  }
  0x26   : > { %s2095_s11 = smov 16   ;;  %p2226_p3 = pnand %p1388_p1, %p405_p2 }
  0x27   : > { %s3003_s3 = sld [smem:[#allocation34_spill]]  ;;  %s336_s23 = scalar_lea.vmem [#allocation8], %s1379_s16 }
  0x28   : > { %s347_s26 = sshll.u32 %s336_s23, 4  ;;  %s2233_s12 = scalar_lea.sflag [#allocation9], %s282_s15  ;;  %s348_s26 = int_to_ptr.vmem [resolvable:$true] %s347_s26 }
  0x29   : > { %s294_s30 = scalar_lea.hbm %s3001_s1, %s1461_s17  ;;  %s3004_s0 = sld [smem:[#allocation31_spill]] }
  0x2a   : > { %s295_s8 = sshll.u32 %s294_s30, 4  ;;  %s3005_s2 = sld [smem:[#allocation33_spill]]  ;;  %s296_s8 = int_to_ptr.hbm [resolvable:$true] %s295_s8 }
  0x2b   : > { %1507 = dma.hbm_to_vmem [thread:$0]  (!%p2206_p0), %s296_s8, 1024, %s298_s19, %s2218_s7, %s2094_s29, %s2094_s29, %s2095_s11  }
  0x2c   : > { %s1478_s19 = smul.u32 192, %s2202_s13 }
  0x2d   : > { %s344_s30 = scalar_lea.hbm %s3003_s3, %s1461_s17  ;;  %s1479_s8 = smul.u32 192, %s2052_s25 }
  0x2e   : > { %s345_s1 = sshll.u32 %s344_s30, 4  ;;  %s261_s28 = scalar_lea.vmem [#allocation2], %s1478_s19  ;;  %s346_s1 = int_to_ptr.hbm [resolvable:$true] %s345_s1 }
  0x2f   : > { %1513 = dma.hbm_to_vmem [thread:$0]  (!%p2206_p0), %s346_s1, 1024, %s348_s26, %s2233_s12, %s2094_s29, %s2094_s29, %s2095_s11  }
  0x30   : > { %s269_s16 = scalar_lea.hbm %s3004_s0, %s1479_s8  ;;  %s272_s23 = sshll.u32 %s261_s28, 4  ;;  %s273_s23 = int_to_ptr.vmem [resolvable:$true] %s272_s23 }
  0x31   : > { %s270_s30 = sshll.u32 %s269_s16, 4  ;;  %s319_s21 = scalar_lea.hbm %s3005_s2, %s1479_s8  ;;  %s271_s30 = int_to_ptr.hbm [resolvable:$true] %s270_s30 }
  0x32   : > { %s258_s1 = scalar_lea.sflag [#allocation3], %s2202_s13  ;;  %s320_s26 = sshll.u32 %s319_s21, 4  ;;  %s321_s26 = int_to_ptr.hbm [resolvable:$true] %s320_s26 }
  0x33   : > { %1504 = dma.hbm_to_vmem [thread:$0]  (!%p2206_p0), %s271_s30, 3072, %s273_s23, %s258_s1, %s2094_s29, %s2094_s29, %s2095_s11  }
  0x34   : > { %s311_s17 = scalar_lea.vmem [#allocation7], %s1478_s19  ;;  %s369_s28 = scalar_lea.hbm %s2977_s4, %s1479_s8 }
  0x35   : > { %s322_s20 = sshll.u32 %s311_s17, 4  ;;  %s370_s15 = sshll.u32 %s369_s28, 4  ;;  %s323_s20 = int_to_ptr.vmem [resolvable:$true] %s322_s20  ;;  %s371_s15 = int_to_ptr.hbm [resolvable:$true] %s370_s15 }
  0x36   : > { %1510 = dma.hbm_to_vmem [thread:$0]  (!%p2206_p0), %s321_s26, 3072, %s323_s20, %s2218_s7, %s2094_s29, %s2094_s29, %s2095_s11  }
  0x37   : > { %s361_s0 = scalar_lea.vmem [#allocation10], %s1478_s19  ;;  %s394_s30 = scalar_lea.hbm %s2978_s5, %s1479_s8 }
  0x38   : > { %s372_s2 = sshll.u32 %s361_s0, 4  ;;  %s395_s1 = sshll.u32 %s394_s30, 4  ;;  %s373_s2 = int_to_ptr.vmem [resolvable:$true] %s372_s2  ;;  %s396_s1 = int_to_ptr.hbm [resolvable:$true] %s395_s1 }
  0x39   : > { %1516 = dma.hbm_to_vmem [thread:$0]  (!%p2206_p0), %s371_s15, 3072, %s373_s2, %s2233_s12, %s2094_s29, %s2094_s29, %s2095_s11  }
  0x3a   : > { %s386_s7 = scalar_lea.vmem [#allocation11], %s1478_s19  ;;  %s383_s17 = scalar_lea.sflag [#allocation12], %s2202_s13 }
  0x3b   : > { %s397_s26 = sshll.u32 %s386_s7, 4  ;;  %409 = sbr.rel (%p2226_p3) target bundleno = 191 (0xbf), region = 44  ;;  %s398_s26 = int_to_ptr.vmem [resolvable:$true] %s397_s26 }
  0x3c   : > { %1519 = dma.hbm_to_vmem [thread:$0]  (!%p2206_p0), %s396_s1, 3072, %s398_s26, %s383_s17, %s2094_s29, %s2094_s29, %s2095_s11  }
  0x3d   : > { %s2282_s0 = sand.u32 (!%p2226_p3), 1, %s2040_s22  }
  0x3e   : > { %s2285_s2 = smul.u32 (!%p2226_p3), 192, %s2282_s0  ;;  %s412_s12 = scalar_lea.sflag (!%p2226_p3), [#allocation3], %s2282_s0 }
  0x40   : > { %s415_s19 = scalar_lea.vmem [#allocation2], %s2285_s2 }
  0x41   : > { %2015 = dma.done.wait (%p2184_p8), %s412_s12, 3072  }
  0x42   : > { %2017 = vsyncadd (%p2184_p8), %s412_s12, 4294964224  ;;  %s421_s29 = sand.u32 1, %s2164_s27   ;;  %s1389_s11 = sshll.u32 %s2282_s0, 6 }
  0x43   : > { %s422_s13 = scalar_lea.sflag [#allocation6], %s421_s29  ;;  %s2295_s14 = scalar_lea.vmem [#allocation5], %s1389_s11 }
  0x44   : > { %2019 = dma.done.wait (%p2184_p8), %s422_s13, 4096  }
  0x45   : > { %2021 = vsyncadd (%p2184_p8), %s422_s13, 4294963200  ;;  %s435_s18 = scalar_lea.vmem [#allocation7], %s2285_s2  ;;  %s442_s8 = scalar_lea.sflag [#allocation9], %s421_s29 }
  0x46   : > { %s2302_s20 = scalar_lea.vmem [#allocation8], %s1389_s11 }
  0x47   : > { %2023 = dma.done.wait (%p2184_p8), %s442_s8, 4096  }
  0x48   : > { %2025 = vsyncadd (%p2184_p8), %s442_s8, 4294963200  ;;  %s455_s27 = scalar_lea.vmem [#allocation10], %s2285_s2  ;;  %s462_s3 = scalar_lea.sflag [#allocation12], %s2282_s0 }
  0x49   : > { %s465_s16 = scalar_lea.vmem [#allocation11], %s2285_s2 }
  0x4a   : > { %2027 = dma.done.wait (%p2184_p8), %s462_s3, 3072  }
  0x4b   : > { %2029 = vsyncadd (%p2184_p8), %s462_s3, 4294964224  ;;  %s1391_s28 = sshll.u32 %s2282_s0, 4  ;;  %v2318_v0 = vmov 0.0   ;;  %v2320_v1 = vmov 0.0   ;;  %v2322_v2 = vmov 0.0   ;;  %v2324_v3 = vmov 0.0  }
  0x4c   : > { %s2316_s15 = scalar_lea.vmem [#allocation13], %s1391_s28  ;;  %v2326_v4 = vmov 0.0   ;;  %v2328_v5 = vmov 0.0   ;;  %v2330_v6 = vmov 0.0   ;;  %v2332_v7 = vmov 0.0   ;;  %s2334_s9 = smov 0  }
  0x4d LB: >> { %3006 = vst [vmem:[#allocation25_spill] sm:$0xff] %v2060_v0  ;;  %s1392_s21 = sshll.u32 %s2092_s9, 4  ;;  %s531_s9 = sadd.s32 1, %s2092_s9   ;;  %s2092_s9 = sphi %s2334_s9, %s531_s9   ;;  %v2088_v7 = vphi %v2332_v7, %v3026_v7   ;;  %v2084_v6 = vphi %v2330_v6, %v3025_v6   ;;  %v2080_v5 = vphi %v2328_v5, %v3024_v5   ;;  %v2076_v4 = vphi %v2326_v4, %v3023_v4   ;;  %v2072_v3 = vphi %v2324_v3, %v3022_v3   ;;  %v2068_v2 = vphi %v2322_v2, %v3021_v2   ;;  %v2064_v1 = vphi %v2320_v1, %v3020_v1   ;;  %v2060_v0 = vphi %v2318_v0, %v3019_v0  }
  0x4e   : >> { %3007 = vst [vmem:[#allocation26_spill] sm:$0xff] %v2064_v1  ;;  %s543_s23 = sshra.s32 %s1392_s21, 3  ;;  %p528_p4 = scmp.ge.s32.totalorder %s531_s9, 2  }
  0x4f   : >> { %3008 = vst [vmem:[#allocation27_spill] sm:$0xff] %v2068_v2  ;;  %s2364_s30 = sshll.u32 %s543_s23, 4  ;;  %s1477_s11 = sshll.u32 (%p528_p4), %s2048_s24, 4 }
  0x50   : >> { %3009 = vst [vmem:[#allocation28_spill] sm:$0xff] %v2072_v3  ;;  %s559_s1 = scalar_lea.vmem %s415_s19, %s2364_s30 [#allocation2]  ;;  %s547_s7 = scalar_lea.vmem %s2295_s14, %s2364_s30 [#allocation5] }
  0x51   : >> { %3010 = vst [vmem:[#allocation29_spill] sm:$0xff] %v2076_v4  ;;  %v2369_v8 = vld [vmem:[%s559_s1] sm:$0xff]  ;;  %v2371_v9 = vld [vmem:[%s559_s1 + $0x8] sm:$0xff]  ;;  %v2373_v10 = vld [vmem:[%s559_s1 + $0x10] sm:$0xff]  ;;  %s2450_s26 = scalar_lea.vmem %s455_s27, %s2364_s30 [#allocation10]  ;;  %s2610_s17 = scalar_lea.vmem %s435_s18, %s2364_s30 [#allocation7] }
  0x52   : >> { %3011 = vst [vmem:[#allocation30_spill] sm:$0xff] %v2080_v5  ;;  %v2375_v11 = vld [vmem:[%s559_s1 + $0x18] sm:$0xff]  ;;  %v2377_v12 = vld [vmem:[%s559_s1 + $0x40] sm:$0xff]  ;;  %v2379_v13 = vld [vmem:[%s559_s1 + $0x48] sm:$0xff]  ;;  %s2748_s12 = scalar_lea.vmem %s2302_s20, %s2364_s30 [#allocation8]  ;;  %s2819_s29 = scalar_lea.vmem %s465_s16, %s2364_s30 [#allocation11] }
  0x53   : >> { %v2381_v14 = vld [vmem:[%s559_s1 + $0x50] sm:$0xff]  ;;  %v2383_v15 = vld [vmem:[%s559_s1 + $0x58] sm:$0xff]  ;;  %v2385_v16 = vld [vmem:[%s559_s1 + $0x80] sm:$0xff]  ;;  %v614_v18 = vmax.f32 %v2369_v8, %v2377_v12  ;;  %v615_v19 = vmax.f32 %v2371_v9, %v2379_v13  ;;  %s1082_s3 = scalar_lea.hbm (%p528_p4), %s2979_s6, %s1477_s11  ;;  %s1084_s24 = sshll.u32 (%p528_p4), %s2316_s15, 4  ;;  %s1085_s24 = int_to_ptr.vmem [resolvable:$true] %s1084_s24 }
  0x54   : >> { %v2387_v17 = vld [vmem:[%s559_s1 + $0x88] sm:$0xff]  ;;  %v616_v20 = vmax.f32 %v2373_v10, %v2381_v14  ;;  %v2395_v21 = vld [vmem:[%s559_s1 + $0x90] sm:$0xff]  ;;  %v2397_v22 = vld [vmem:[%s559_s1 + $0x98] sm:$0xff]  ;;  %v617_v23 = vmax.f32 %v2375_v11, %v2383_v15  ;;  %s1086_s2 = sshll.u32 (%p528_p4), %s1082_s3, 4  ;;  %s1069_s19 = scalar_lea.sflag (%p528_p4), [#allocation4], %s2282_s0  ;;  %s1087_s2 = int_to_ptr.hbm [resolvable:$true] %s1086_s2 }
  0x55   : >> { %v2402_v24 = vmax.f32 %v614_v18, %v2385_v16  ;;  %v2405_v25 = vmax.f32 %v615_v19, %v2387_v17  ;;  %v2425_v33 = vld [vmem:[%s547_s7] sm:$0xff]  ;;  %v2431_v37 = vld [vmem:[%s547_s7 + $0x8] sm:$0xff]  ;;  %v2439_v42 = vld [vmem:[%s547_s7 + $0x10] sm:$0xff]  ;;  %s1940_s14 = sshra.s32 (%p528_p4), %s1087_s2, 4  ;;  %s1946_s16 = scalar_lea.hbm (%p528_p4), %s2979_s6, 32  ;;  %s1941_s14 = int_to_ptr.hbm [resolvable:$true] %s1940_s14 }
  0x56   : >> { %v2408_v26 = vmax.f32 %v616_v20, %v2395_v21  ;;  %v2413_v27 = vmax.f32 %v617_v23, %v2397_v22  ;;  %v2445_v46 = vld [vmem:[%s547_s7 + $0x18] sm:$0xff]  ;;  %vm682_vm0 = vcmp.eq.s32.totalorder %v2425_v33, 0  ;;  %vm683_vm1 = vcmp.eq.s32.totalorder %v2431_v37, 0  ;;  %v2455_v54 = vld [vmem:[%s2450_s26] sm:$0xff]  ;;  %v2458_v55 = vld [vmem:[%s2450_s26 + $0x8] sm:$0xff]  ;;  %s1942_s18 = scalar_lea.hbm (%p528_p4), %s1941_s14, 16  ;;  %p1947_p8 = scmp.lt.s32.totalorder (%p528_p4), %s1941_s14, %s2979_s6 }
  0x57   : >> { %v622_v28 = vsub.f32 %v2369_v8, %v2402_v24  ;;  %v623_v29 = vsub.f32 %v2371_v9, %v2405_v25  ;;  %v638_v32 = vsub.f32 %v2377_v12, %v2402_v24  ;;  %v639_v35 = vsub.f32 %v2379_v13, %v2405_v25  ;;  %v2463_v57 = vld [vmem:[%s2450_s26 + $0x40] sm:$0xff]  ;;  %v2466_v58 = vld [vmem:[%s2450_s26 + $0x48] sm:$0xff]  ;;  %v2480_v19 = vld [vmem:[%s2450_s26 + $0x10] sm:$0xff]  ;;  %p1943_p5 = scmp.ne.s32.totalorder (%p528_p4), %s1941_s14, %s1942_s18  ;;  %p1948_p10 = scmp.lt.s32.totalorder (%p528_p4), %s1946_s16, %s1942_s18 }
  0x58   : >> { %v624_v30 = vsub.f32 %v2373_v10, %v2408_v26  ;;  %v625_v31 = vsub.f32 %v2375_v11, %v2413_v27  ;;  %v640_v36 = vsub.f32 %v2381_v14, %v2408_v26  ;;  %v641_v39 = vsub.f32 %v2383_v15, %v2413_v27  ;;  %v2483_v20 = vld [vmem:[%s2450_s26 + $0x50] sm:$0xff]  ;;  %v2780_v2 = vld [vmem:[%s2748_s12 + $0x18] sm:$0xff] }
  0x59   : >> { %v626_v34 = vmul.f32 1.442695, %v622_v28  ;;  %v628_v38 = vmul.f32 1.442695, %v623_v29  ;;  %v654_v40 = vsub.f32 %v2385_v16, %v2402_v24  ;;  %v655_v41 = vsub.f32 %v2387_v17, %v2405_v25  ;;  %v2777_v1 = vld [vmem:[%s2748_s12 + $0x10] sm:$0xff]  ;;  %p1944_p6 = pnand (%p528_p4), %p1943_p5, %p2188_p9  ;;  %p1949_p13 = por (%p528_p4), %p1948_p10, %p1947_p8 }
  0x5a   : >> { %v630_v43 = vmul.f32 1.442695, %v624_v30  ;;  %v656_v44 = vsub.f32 %v2395_v21, %v2408_v26  ;;  %v657_v45 = vsub.f32 %v2397_v22, %v2413_v27  ;;  %v632_v47 = vmul.f32 1.442695, %v625_v31  ;;  %v2506_v31 = vld [vmem:[%s2450_s26 + $0x58] sm:$0xff] }
  0x5b   : >> { %1650 = vpow2.f32 %v626_v34  ;;  %v642_v48 = vmul.f32 1.442695, %v638_v32  ;;  %v644_v49 = vmul.f32 1.442695, %v639_v35  ;;  %v646_v50 = vmul.f32 1.442695, %v640_v36  ;;  %p1945_p7 = pneg (%p528_p4), %p1944_p6 }
  0x5c   : >> { %1652 = vpow2.f32 %v628_v38  ;;  %v648_v51 = vmul.f32 1.442695, %v641_v39  ;;  %v658_v52 = vmul.f32 1.442695, %v654_v40  ;;  %v660_v53 = vmul.f32 1.442695, %v655_v41 }
  0x5d   : >> { %1654 = vpow2.f32 %v630_v43  ;;  %v662_v56 = vmul.f32 1.442695, %v656_v44  ;;  %vm684_vm2 = vcmp.eq.s32.totalorder %v2439_v42, 0  ;;  %vm685_vm3 = vcmp.eq.s32.totalorder %v2445_v46, 0  ;;  %v2519_v39 = vld [vmem:[%s2450_s26 + $0x80] sm:$0xff]  ;;  %v2536_v44 = vld [vmem:[%s2450_s26 + $0x90] sm:$0xff]  ;;  %p1950_p0 = pnand (%p528_p4), %p1949_p13, %p1945_p7 }
  0x5e   : >> { %1656 = vpow2.f32 %v632_v47  ;;  %v664_v59 = vmul.f32 1.442695, %v657_v45  ;;  %v686_v60 = vsel %vm682_vm0, %v2369_v8, 0.0  ;;  %v687_v61 = vsel %vm683_vm1, %v2371_v9, 0.0  ;;  %v2539_v45 = vld [vmem:[%s2450_s26 + $0x98] sm:$0xff] }
  0x5f   : >> { %1658 = vpow2.f32 %v642_v48  ;;  %v688_v63 = vsel %vm684_vm2, %v2373_v10, 0.0  ;;  %vm690_vm4 = vcmp.eq.s32.totalorder %v2425_v33, 1  ;;  %vm691_vm5 = vcmp.eq.s32.totalorder %v2431_v37, 1 }
  0x60   : >> { %1660 = vpow2.f32 %v644_v49  ;;  %v689_v8 = vsel %vm685_vm3, %v2375_v11, 0.0  ;;  %vm692_vm6 = vcmp.eq.s32.totalorder %v2439_v42, 1  ;;  %vm693_vm7 = vcmp.eq.s32.totalorder %v2445_v46, 1 }
  0x61   : >> { %v1651_v62 = vpop.eup %1650  ;;  %1662 = vpow2.f32 %v646_v50  ;;  %v694_v10 = vsel %vm690_vm4, %v2377_v12, %v686_v60  ;;  %v726_v23 = vmax.f32 %v2455_v54, %v2463_v57  ;;  %v727_v28 = vmax.f32 %v2458_v55, %v2466_v58  ;;  %v2503_v12 = vld [vmem:[%s2450_s26 + $0x18] sm:$0xff] }
  0x62   : >> { %v1653_v18 = vpop.eup %1652  ;;  %1664 = vpow2.f32 %v648_v51  ;;  %v695_v11 = vsel %vm691_vm5, %v2379_v13, %v687_v61  ;;  %vm698_vm8 = vcmp.eq.s32.totalorder %v2425_v33, 2  ;;  %vm699_vm9 = vcmp.eq.s32.totalorder %v2431_v37, 2 }
  0x63   : >> { %v1655_v9 = vpop.eup %1654  ;;  %1666 = vpow2.f32 %v658_v52  ;;  %v696_v32 = vsel %vm692_vm6, %v2381_v14, %v688_v63  ;;  %v697_v13 = vsel %vm693_vm7, %v2383_v15, %v689_v8  ;;  %v728_v34 = vmax.f32 %v2480_v19, %v2483_v20  ;;  %v2522_v14 = vld [vmem:[%s2450_s26 + $0x88] sm:$0xff] }
  0x64   : >> { %v1657_v29 = vpop.eup %1656  ;;  %1668 = vpow2.f32 %v660_v53  ;;  %vm700_vm10 = vcmp.eq.s32.totalorder %v2439_v42, 2  ;;  %vm701_vm11 = vcmp.eq.s32.totalorder %v2445_v46, 2  ;;  %v2527_v15 = vsel %vm698_vm8, %v2385_v16, %v694_v10 }
  0x65   : >> { %v1659_v30 = vpop.eup %1658  ;;  %1670 = vpow2.f32 %v662_v56  ;;  %v2532_v41 = vsel %vm699_vm9, %v2387_v17, %v695_v11  ;;  %vm706_vm12 = vcmp.ne.s32.totalorder %v2425_v33, 255  ;;  %vm707_vm13 = vcmp.ne.s32.totalorder %v2431_v37, 255 }
  0x66   : >> { %v1661_v35 = vpop.eup %1660  ;;  %v650_v36 = vadd.f32 %v1659_v30, %v1651_v62  ;;  %1672 = vpow2.f32 %v664_v59  ;;  %v729_v48 = vmax.f32 %v2503_v12, %v2506_v31  ;;  %v2547_v17 = vsel %vm700_vm10, %v2395_v21, %v696_v32 }
  0x67   : >> { %v1663_v38 = vpop.eup %1662  ;;  %v651_v40 = vadd.f32 %v1661_v35, %v1653_v18  ;;  %v2552_v50 = vsel %vm701_vm11, %v2397_v22, %v697_v13  ;;  %vm708_vm14 = vcmp.ne.s32.totalorder %v2439_v42, 255  ;;  %v2096_v53 = vmov 0.0  }
  0x68   : >> { %v1665_v43 = vpop.eup %1664  ;;  %v652_v47 = vadd.f32 %v1663_v38, %v1655_v9  ;;  %v2558_v56 = vsel %vm706_vm12, 1.0, %v2096_v53  ;;  %v2561_v59 = vmax.f32 %v726_v23, %v2519_v39  ;;  %v2564_v21 = vmax.f32 %v727_v28, %v2522_v14 }
  0x69   : >> { %v1667_v16 = vpop.eup %1666  ;;  %v653_v49 = vadd.f32 %v1665_v43, %v1657_v29  ;;  %v2569_v22 = vsel %vm707_vm13, 1.0, %v2096_v53  ;;  %v2572_v62 = vmax.f32 %v728_v34, %v2536_v44  ;;  %v2575_v63 = vmax.f32 %v729_v48, %v2539_v45 }
  0x6a   : >> { %v1669_v51 = vpop.eup %1668  ;;  %v666_v52 = vadd.f32 %v1667_v16, %v650_v36  ;;  %v734_v9 = vsub.f32 %v2455_v54, %v2561_v59  ;;  %v735_v10 = vsub.f32 %v2458_v55, %v2564_v21  ;;  %vm709_vm15 = vcmp.ne.s32.totalorder %v2445_v46, 255 }
  0x6b   : >> { %v1671_v60 = vpop.eup %1670  ;;  %v667_v61 = vadd.f32 %v1669_v51, %v651_v40  ;;  %v736_v28 = vsub.f32 %v2480_v19, %v2572_v62  ;;  %v737_v29 = vsub.f32 %v2503_v12, %v2575_v63  ;;  %v750_v32 = vsub.f32 %v2463_v57, %v2561_v59 }
  0x6c   : >> { %v1673_v18 = vpop.eup %1672  ;;  %v668_v8 = vadd.f32 %v1671_v60, %v652_v47  ;;  %1674 = vlog2.f32 %v666_v52  ;;  %v738_v11 = vmul.f32 1.442695, %v734_v9  ;;  %v740_v30 = vmul.f32 1.442695, %v735_v10 }
  0x6d   : >> { %v669_v23 = vadd.f32 %v1673_v18, %v653_v49  ;;  %1676 = vlog2.f32 %v667_v61  ;;  %v742_v13 = vmul.f32 1.442695, %v736_v28  ;;  %v744_v34 = vmul.f32 1.442695, %v737_v29 }
  0x6e   : >> { %1678 = vlog2.f32 %v668_v8  ;;  %v751_v35 = vsub.f32 %v2466_v58, %v2564_v21  ;;  %v752_v36 = vsub.f32 %v2483_v20, %v2572_v62  ;;  %v753_v38 = vsub.f32 %v2506_v31, %v2575_v63 }
  0x6f   : >> { %1680 = vlog2.f32 %v669_v23  ;;  %v754_v40 = vmul.f32 1.442695, %v750_v32  ;;  %v766_v47 = vsub.f32 %v2519_v39, %v2561_v59  ;;  %v767_v48 = vsub.f32 %v2522_v14, %v2564_v21 }
  0x70   : >> { %1682 = vpow2.f32 %v738_v11  ;;  %v756_v43 = vmul.f32 1.442695, %v751_v35  ;;  %v2601_v49 = vsel %vm708_vm14, 1.0, %v2096_v53  ;;  %v758_v51 = vmul.f32 1.442695, %v752_v36 }
  0x71   : >> { %1684 = vpow2.f32 %v740_v30  ;;  %v768_v52 = vsub.f32 %v2536_v44, %v2572_v62  ;;  %v760_v18 = vmul.f32 1.442695, %v753_v38  ;;  %v769_v8 = vsub.f32 %v2539_v45, %v2575_v63 }
  0x72   : >> { %v1675_v16 = vpop.eup %1674  ;;  %1686 = vpow2.f32 %v742_v13  ;;  %v770_v23 = vmul.f32 1.442695, %v766_v47  ;;  %v772_v28 = vmul.f32 1.442695, %v767_v48 }
  0x73   : >> { %v1677_v60 = vpop.eup %1676  ;;  %v671_v61 = vmul.f32 0.6931472, %v1675_v16  ;;  %1688 = vpow2.f32 %v744_v34  ;;  %v774_v32 = vmul.f32 1.442695, %v768_v52  ;;  %v776_v36 = vmul.f32 1.442695, %v769_v8 }
  0x74   : >> { %v1679_v9 = vpop.eup %1678  ;;  %v673_v10 = vmul.f32 0.6931472, %v1677_v60  ;;  %1690 = vpow2.f32 %v754_v40  ;;  %v2615_v16 = vld [vmem:[%s2610_s17] sm:$0xff]  ;;  %v2642_v52 = vld [vmem:[%s2610_s17 + $0x8] sm:$0xff]  ;;  %v2659_v8 = vld [vmem:[%s2610_s17 + $0x50] sm:$0xff] }
  0x75   : >> { %v1681_v29 = vpop.eup %1680  ;;  %v675_v11 = vmul.f32 0.6931472, %v1679_v9  ;;  %v678_v30 = vadd.f32 %v671_v61, %v2402_v24  ;;  %1692 = vpow2.f32 %v756_v43  ;;  %v2618_v60 = vld [vmem:[%s2610_s17 + $0x40] sm:$0xff]  ;;  %v794_v24 = vsel %vm682_vm0, %v2455_v54, 0.0 }
  0x76   : >> { %v1683_v13 = vpop.eup %1682  ;;  %v677_v34 = vmul.f32 0.6931472, %v1681_v29  ;;  %v679_v35 = vadd.f32 %v673_v10, %v2405_v25  ;;  %1694 = vpow2.f32 %v758_v51  ;;  %v2636_v54 = vsel %vm709_vm15, 1.0, %v2096_v53  ;;  %v2675_v29 = vld [vmem:[%s2610_s17 + $0x80] sm:$0xff] }
  0x77   : >> { %v1685_v38 = vpop.eup %1684  ;;  %v680_v40 = vadd.f32 %v675_v11, %v2408_v26  ;;  %v710_v47 = vsub.f32 %v678_v30, %v2527_v15  ;;  %1696 = vpow2.f32 %v760_v18  ;;  %v795_v26 = vsel %vm683_vm1, %v2458_v55, 0.0  ;;  %v2656_v18 = vld [vmem:[%s2610_s17 + $0x48] sm:$0xff] }
  0x78   : >> { %v1687_v43 = vpop.eup %1686  ;;  %v2626_v25 = vadd.f32 %v677_v34, %v2413_v27  ;;  %v711_v48 = vsub.f32 %v679_v35, %v2532_v41  ;;  %1698 = vpow2.f32 %v770_v23  ;;  %v796_v27 = vsel %vm684_vm2, %v2480_v19, 0.0  ;;  %v2653_v19 = vld [vmem:[%s2610_s17 + $0x10] sm:$0xff]  ;;  %v2669_v23 = vld [vmem:[%s2610_s17 + $0x18] sm:$0xff]  ;;  %v2687_v34 = vld [vmem:[%s2610_s17 + $0x88] sm:$0xff] }
  0x79   : >> { %v1689_v15 = vpop.eup %1688  ;;  %v712_v51 = vsub.f32 %v680_v40, %v2547_v17  ;;  %1700 = vpow2.f32 %v772_v28  ;;  %v797_v55 = vsel %vm685_vm3, %v2503_v12, 0.0  ;;  %v798_v17 = vsel %vm690_vm4, %v2463_v57, %v794_v24  ;;  %v2672_v28 = vld [vmem:[%s2610_s17 + $0x58] sm:$0xff]  ;;  %v2690_v35 = vld [vmem:[%s2610_s17 + $0x90] sm:$0xff] }
  0x7a   : >> { %v1691_v41 = vpop.eup %1690  ;;  %1702 = vpow2.f32 %v774_v32  ;;  %v814_v53 = vmax.f32 %v2615_v16, %v2618_v60  ;;  %v2663_v9 = vsel %vm706_vm12, %v710_v47, 0.0  ;;  %v799_v57 = vsel %vm691_vm5, %v2466_v58, %v795_v26  ;;  %v2705_v24 = vld [vmem:[%s2610_s17 + $0x98] sm:$0xff] }
  0x7b   : >> { %v1693_v61 = vpop.eup %1692  ;;  %v762_v12 = vadd.f32 %v1691_v41, %v1683_v13  ;;  %1704 = vpow2.f32 %v776_v36  ;;  %v2681_v30 = vsel %vm707_vm13, %v711_v48, 0.0  ;;  %v800_v58 = vsel %vm692_vm6, %v2483_v20, %v796_v27 }
  0x7c   : >> { %v1695_v10 = vpop.eup %1694  ;;  %v763_v32 = vadd.f32 %v1693_v61, %v1685_v38  ;;  %v2694_v36 = vsel %vm708_vm14, %v712_v51, 0.0  ;;  %v801_v47 = vsel %vm693_vm7, %v2506_v31, %v797_v55  ;;  %v2702_v38 = vsel %vm698_vm8, %v2519_v39, %v798_v17 }
  0x7d   : >> { %v1697_v13 = vpop.eup %1696  ;;  %v764_v40 = vadd.f32 %v1695_v10, %v1687_v43  ;;  %v2710_v26 = vsel %vm699_vm9, %v2522_v14, %v799_v57  ;;  %v815_v43 = vmax.f32 %v2642_v52, %v2656_v18  ;;  %v816_v31 = vmax.f32 %v2653_v19, %v2659_v8 }
  0x7e   : >> { %v1699_v20 = vpop.eup %1698  ;;  %v765_v48 = vadd.f32 %v1697_v13, %v1689_v15  ;;  %v2719_v39 = vsel %vm700_vm10, %v2536_v44, %v800_v58  ;;  %v817_v15 = vmax.f32 %v2669_v23, %v2672_v28  ;;  %v2724_v14 = vmax.f32 %v814_v53, %v2675_v29 }
  0x7f   : >> { %v1701_v51 = vpop.eup %1700  ;;  %v778_v27 = vadd.f32 %v1699_v20, %v762_v12  ;;  %v2729_v17 = vsel %vm701_vm11, %v2539_v45, %v801_v47  ;;  %v2732_v61 = vmax.f32 %v815_v43, %v2687_v34  ;;  %v2735_v44 = vmax.f32 %v816_v31, %v2690_v35 }
  0x80   : >> { %v1703_v41 = vpop.eup %1702  ;;  %v779_v55 = vadd.f32 %v1701_v51, %v763_v32  ;;  %v2738_v10 = vmax.f32 %v817_v15, %v2705_v24  ;;  %v822_v53 = vsub.f32 %v2615_v16, %v2724_v14  ;;  %v838_v47 = vsub.f32 %v2618_v60, %v2724_v14  ;;  %v2761_v15 = vld [vmem:[%s2748_s12] sm:$0xff] }
  0x81   : >> { %v1705_v12 = vpop.eup %1704  ;;  %v780_v57 = vadd.f32 %v1703_v41, %v764_v40  ;;  %1706 = vlog2.f32 %v778_v27  ;;  %v823_v45 = vsub.f32 %v2642_v52, %v2732_v61  ;;  %v824_v58 = vsub.f32 %v2653_v19, %v2735_v44 }
  0x82   : >> { %v781_v32 = vadd.f32 %v1705_v12, %v765_v48  ;;  %1708 = vlog2.f32 %v779_v55  ;;  %v825_v13 = vsub.f32 %v2669_v23, %v2738_v10  ;;  %v826_v40 = vmul.f32 1.442695, %v822_v53 }
  0x83   : >> { %1710 = vlog2.f32 %v780_v57  ;;  %v828_v20 = vmul.f32 1.442695, %v823_v45  ;;  %v830_v48 = vmul.f32 1.442695, %v824_v58  ;;  %v839_v43 = vsub.f32 %v2656_v18, %v2732_v61 }
  0x84   : >> { %1712 = vlog2.f32 %v781_v32  ;;  %v832_v31 = vmul.f32 1.442695, %v825_v13  ;;  %v840_v51 = vsub.f32 %v2659_v8, %v2735_v44  ;;  %v841_v27 = vsub.f32 %v2672_v28, %v2738_v10 }
  0x85   : >> { %1714 = vpow2.f32 %v826_v40  ;;  %v842_v41 = vmul.f32 1.442695, %v838_v47  ;;  %v844_v55 = vmul.f32 1.442695, %v839_v43  ;;  %v854_v12 = vsub.f32 %v2675_v29, %v2724_v14 }
  0x86   : >> { %1716 = vpow2.f32 %v828_v20  ;;  %v846_v53 = vmul.f32 1.442695, %v840_v51  ;;  %v848_v32 = vmul.f32 1.442695, %v841_v27  ;;  %v855_v45 = vsub.f32 %v2687_v34, %v2732_v61  ;;  %v2773_v27 = vld [vmem:[%s2748_s12 + $0x8] sm:$0xff] }
  0x87   : >> { %v1707_v57 = vpop.eup %1706  ;;  %1718 = vpow2.f32 %v830_v48  ;;  %v856_v40 = vsub.f32 %v2690_v35, %v2735_v44  ;;  %v857_v47 = vsub.f32 %v2705_v24, %v2738_v10  ;;  %v858_v48 = vmul.f32 1.442695, %v854_v12 }
  0x88   : >> { %v1709_v58 = vpop.eup %1708  ;;  %v783_v13 = vmul.f32 0.6931472, %v1707_v57  ;;  %1720 = vpow2.f32 %v832_v31  ;;  %vm882_vm0 = vcmp.eq.s32.totalorder %v2761_v15, 0  ;;  %v860_v31 = vmul.f32 1.442695, %v855_v45 }
  0x89   : >> { %v1711_v20 = vpop.eup %1710  ;;  %v785_v43 = vmul.f32 0.6931472, %v1709_v58  ;;  %1722 = vpow2.f32 %v842_v41  ;;  %v862_v41 = vmul.f32 1.442695, %v856_v40  ;;  %vm883_vm1 = vcmp.eq.s32.totalorder %v2773_v27, 0 }
  0x8a   : >> { %v1713_v51 = vpop.eup %1712  ;;  %v787_v11 = vmul.f32 0.6931472, %v1711_v20  ;;  %v790_v57 = vadd.f32 %v783_v13, %v2561_v59  ;;  %1724 = vpow2.f32 %v844_v55  ;;  %v864_v20 = vmul.f32 1.442695, %v857_v47 }
  0x8b   : >> { %v1715_v0 = vpop.eup %1714  ;;  %v789_v3 = vmul.f32 0.6931472, %v1713_v51  ;;  %v791_v58 = vadd.f32 %v785_v43, %v2564_v21  ;;  %1726 = vpow2.f32 %v846_v53  ;;  %v3012_v21 = vsub.f32 %v2626_v25, %v2552_v50 }
  0x8c   : >> { %v1717_v12 = vpop.eup %1716  ;;  %v792_v4 = vadd.f32 %v787_v11, %v2572_v62  ;;  %v806_v5 = vsub.f32 %v790_v57, %v2702_v38  ;;  %1728 = vpow2.f32 %v848_v32  ;;  %vm884_vm2 = vcmp.eq.s32.totalorder %v2777_v1, 0 }
  0x8d   : >> { %v1719_v59 = vpop.eup %1718  ;;  %v793_v55 = vadd.f32 %v789_v3, %v2575_v63  ;;  %v807_v45 = vsub.f32 %v791_v58, %v2710_v26  ;;  %1730 = vpow2.f32 %v858_v48  ;;  %v2793_v53 = vsel %vm709_vm15, %v3012_v21, 0.0  ;;  %v922_v58 = vld [vmem:[%s2819_s29 + $0x10] sm:$0xff] }
  0x8e   : >> { %v1721_v13 = vpop.eup %1720  ;;  %1732 = vpow2.f32 %v860_v31  ;;  %vm885_vm3 = vcmp.eq.s32.totalorder %v2780_v2, 0  ;;  %v808_v3 = vsub.f32 %v792_v4, %v2719_v39  ;;  %v2801_v11 = vsel %vm706_vm12, %v806_v5, 0.0 }
  0x8f   : >> { %v1723_v62 = vpop.eup %1722  ;;  %v809_v63 = vsub.f32 %v793_v55, %v2729_v17  ;;  %1734 = vpow2.f32 %v862_v41  ;;  %v886_v38 = vsel %vm882_vm0, %v2615_v16, 0.0  ;;  %v887_v26 = vsel %vm883_vm1, %v2642_v52, 0.0  ;;  %v1442_v41 = vld [vmem:[%s2819_s29 + $0x40] sm:$0xff]  ;;  %v1444_v55 = vld [vmem:[%s2819_s29 + $0x50] sm:$0xff] }
  0x90   : >> { %v1725_v50 = vpop.eup %1724  ;;  %v850_v25 = vadd.f32 %v1723_v62, %v1715_v0  ;;  %1736 = vpow2.f32 %v864_v20  ;;  %v2809_v4 = vsel %vm707_vm13, %v807_v45, 0.0  ;;  %v888_v5 = vsel %vm884_vm2, %v2653_v19, 0.0  ;;  %v1445_v45 = vld [vmem:[%s2819_s29 + $0x58] sm:$0xff]  ;;  %v1449_v62 = vld [vmem:[%s2819_s29 + $0x88] sm:$0xff] }
  0x91   : >> { %v1727_v32 = vpop.eup %1726  ;;  %v851_v33 = vadd.f32 %v1725_v50, %v1717_v12  ;;  %v889_v39 = vsel %vm885_vm3, %v2669_v23, 0.0  ;;  %vm890_vm4 = vcmp.eq.s32.totalorder %v2761_v15, 1  ;;  %vm891_vm5 = vcmp.eq.s32.totalorder %v2773_v27, 1  ;;  %v1443_v12 = vld [vmem:[%s2819_s29 + $0x48] sm:$0xff]  ;;  %v1451_v50 = vld [vmem:[%s2819_s29 + $0x98] sm:$0xff] }
  0x92   : >> { %v1729_v17 = vpop.eup %1728  ;;  %v852_v40 = vadd.f32 %v1727_v32, %v1719_v59  ;;  %vm892_vm6 = vcmp.eq.s32.totalorder %v2777_v1, 1  ;;  %vm893_vm7 = vcmp.eq.s32.totalorder %v2780_v2, 1  ;;  %v894_v16 = vsel %vm890_vm4, %v2618_v60, %v886_v38  ;;  %v920_v60 = vld [vmem:[%s2819_s29] sm:$0xff]  ;;  %v923_v59 = vld [vmem:[%s2819_s29 + $0x18] sm:$0xff] }
  0x93   : >> { %v1731_v0 = vpop.eup %1730  ;;  %v853_v37 = vadd.f32 %v1729_v17, %v1721_v13  ;;  %v895_v52 = vsel %vm891_vm5, %v2656_v18, %v887_v26  ;;  %v896_v47 = vsel %vm892_vm6, %v2659_v8, %v888_v5  ;;  %v897_v43 = vsel %vm893_vm7, %v2672_v28, %v889_v39  ;;  %v921_v18 = vld [vmem:[%s2819_s29 + $0x8] sm:$0xff] }
  0x94   : >> { %v1733_v19 = vpop.eup %1732  ;;  %v866_v23 = vadd.f32 %v1731_v0, %v850_v25  ;;  %vm898_vm8 = vcmp.eq.s32.totalorder %v2761_v15, 2  ;;  %vm899_vm9 = vcmp.eq.s32.totalorder %v2773_v27, 2  ;;  %vm900_vm10 = vcmp.eq.s32.totalorder %v2777_v1, 2 }
  0x95   : >> { %v1735_v48 = vpop.eup %1734  ;;  %v867_v51 = vadd.f32 %v1733_v19, %v851_v33  ;;  %vm901_vm11 = vcmp.eq.s32.totalorder %v2780_v2, 2  ;;  %v2834_v28 = vsel %vm708_vm14, %v808_v3, 0.0  ;;  %v2838_v57 = vsel %vm709_vm15, %v809_v63, 0.0  ;;  %v1450_v63 = vld [vmem:[%s2819_s29 + $0x90] sm:$0xff] }
  0x96   : >> { %v1737_v8 = vpop.eup %1736  ;;  %v868_v31 = vadd.f32 %v1735_v48, %v852_v40  ;;  %1738 = vlog2.f32 %v866_v23  ;;  %v902_v42 = vsel %vm898_vm8, %v2675_v29, %v894_v16  ;;  %v2849_v46 = vsel %vm899_vm9, %v2687_v34, %v895_v52  ;;  %v1448_v29 = vld [vmem:[%s2819_s29 + $0x80] sm:$0xff] }
  0x97   : >> { %v869_v20 = vadd.f32 %v1737_v8, %v853_v37  ;;  %1740 = vlog2.f32 %v867_v51  ;;  %v904_v13 = vsel %vm900_vm10, %v2690_v35, %v896_v47  ;;  %v2860_v21 = vsel %vm901_vm11, %v2705_v24, %v897_v43 }
  0x98   : >> { %1742 = vlog2.f32 %v868_v31  ;;  %vm906_vm12 = vcmp.ne.s32.totalorder %v2761_v15, 0  ;;  %vm907_vm13 = vcmp.ne.s32.totalorder %v2773_v27, 0  ;;  %v930_v34 = vmax.f32 %v920_v60, %v1442_v41 }
  0x99   : >> { %1744 = vlog2.f32 %v869_v20  ;;  %v931_v3 = vmax.f32 %v921_v18, %v1443_v12  ;;  %vm908_vm14 = vcmp.ne.s32.totalorder %v2777_v1, 0  ;;  %v932_v25 = vmax.f32 %v922_v58, %v1444_v55 }
  0x9a   : >> { %v933_v35 = vmax.f32 %v923_v59, %v1445_v45  ;;  %v956_v38 = vadd.f32 %v2694_v36, %v2663_v9  ;;  %v963_v24 = vadd.f32 %v2793_v53, %v2681_v30  ;;  %vm909_vm15 = vcmp.ne.s32.totalorder %v2780_v2, 0 }
  0x9b   : >> { %v940_v26 = vmax.f32 %v930_v34, %v1448_v29  ;;  %v941_v32 = vmax.f32 %v931_v3, %v1449_v62  ;;  %v972_v33 = vadd.f32 %v2601_v49, %v2558_v56  ;;  %v979_v5 = vadd.f32 %v2636_v54, %v2569_v22 }
  0x9c   : >> { %v1739_v39 = vpop.eup %1738  ;;  %v942_v17 = vmax.f32 %v932_v25, %v1450_v63  ;;  %v943_v40 = vmax.f32 %v933_v35, %v1451_v50  ;;  %v957_v0 = vrot.slane %v956_v38, 4  ;;  %v964_v37 = vrot.slane %v963_v24, 4 }
  0x9d   : >> { %v1741_v16 = vpop.eup %1740  ;;  %v871_v9 = vmul.f32 0.6931472, %v1739_v39  ;;  %v944_v36 = vmul.f32 %v940_v26, %v940_v26  ;;  %v945_v52 = vmul.f32 %v941_v32, %v941_v32  ;;  %v973_v30 = vrot.slane %v972_v33, 4 }
  0x9e   : >> { %v1743_v53 = vpop.eup %1742  ;;  %v873_v19 = vmul.f32 0.6931472, %v1741_v16  ;;  %v946_v23 = vmul.f32 %v942_v17, %v942_v17  ;;  %v947_v47 = vmul.f32 %v943_v40, %v943_v40  ;;  %v958_v43 = vadd.f32 %v957_v0, %v956_v38 }
  0x9f   : >> { %v1745_v48 = vpop.eup %1744  ;;  %v875_v56 = vmul.f32 0.6931472, %v1743_v53  ;;  %v878_v49 = vadd.f32 %v871_v9, %v2724_v14  ;;  %v948_v22 = vmul.f32 %v944_v36, %v940_v26  ;;  %v949_v54 = vmul.f32 %v945_v52, %v941_v32 }
  0xa0   : >> { %v877_v51 = vmul.f32 0.6931472, %v1745_v48  ;;  %v879_v60 = vadd.f32 %v873_v19, %v2732_v61  ;;  %v950_v18 = vmul.f32 %v946_v23, %v942_v17  ;;  %v951_v8 = vmul.f32 %v947_v47, %v943_v40 }
  0xa1   : >> { %v880_v31 = vadd.f32 %v875_v56, %v2735_v44  ;;  %v910_v58 = vsub.f32 %v878_v49, %v902_v42  ;;  %v959_v41 = vrot.slane %v958_v43, 2  ;;  %v965_v12 = vadd.f32 %v964_v37, %v963_v24  ;;  %v3014_v56 = vld [vmem:[#allocation29_spill] sm:$0xff] }
  0xa2   : >> { %v881_v20 = vadd.f32 %v877_v51, %v2738_v10  ;;  %v911_v59 = vsub.f32 %v879_v60, %v2849_v46  ;;  %v974_v55 = vadd.f32 %v973_v30, %v972_v33  ;;  %v980_v45 = vrot.slane %v979_v5, 4 }
  0xa3   : >> { %v912_v29 = vsub.f32 %v880_v31, %v904_v13  ;;  %v914_v14 = vsel %vm906_vm12, %v910_v58, 0.0  ;;  %v960_v62 = vadd.f32 %v959_v41, %v958_v43  ;;  %v966_v34 = vrot.slane %v965_v12, 2 }
  0xa4   : >> { %v913_v61 = vsub.f32 %v881_v20, %v2860_v21  ;;  %v915_v44 = vsel %vm907_vm13, %v911_v59, 0.0  ;;  %v952_v42 = vmul.f32 %v948_v22, %v914_v14  ;;  %v975_v3 = vrot.slane %v974_v55, 2 }
  0xa5   : >> { %v916_v10 = vsel %vm908_vm14, %v912_v29, 0.0  ;;  %v953_v63 = vmul.f32 %v949_v54, %v915_v44  ;;  %v961_v46 = vrot.slane %v960_v62, 1  ;;  %v967_v50 = vadd.f32 %v966_v34, %v965_v12  ;;  %v3015_v12 = vld [vmem:[#allocation28_spill] sm:$0xff]  ;;  %v3017_v29 = vld [vmem:[#allocation26_spill] sm:$0xff] }
  0xa6   : >> { %v917_v13 = vsel %vm909_vm15, %v913_v61, 0.0  ;;  %v954_v15 = vmul.f32 %v950_v18, %v916_v10  ;;  %v976_v25 = vadd.f32 %v975_v3, %v974_v55  ;;  %v981_v35 = vadd.f32 %v980_v45, %v979_v5  ;;  %v3016_v55 = vld [vmem:[#allocation27_spill] sm:$0xff] }
  0xa7   : >> { %v955_v38 = vmul.f32 %v951_v8, %v917_v13  ;;  %v962_v24 = vadd.f32 %v961_v46, %v960_v62  ;;  %v968_v21 = vrot.slane %v967_v50, 1  ;;  %v988_v27 = vadd.f32 %v2834_v28, %v2801_v11  ;;  %v3013_v28 = vld [vmem:[#allocation30_spill] sm:$0xff]  ;;  %v3018_v62 = vld [vmem:[#allocation25_spill] sm:$0xff] }
  0xa8   : >> { %v977_v26 = vrot.slane %v976_v25, 1  ;;  %v982_v32 = vrot.slane %v981_v35, 2  ;;  %v995_v1 = vadd.f32 %v2838_v57, %v2809_v4  ;;  %v1006_v33 = vadd.f32 %v954_v15, %v952_v42 }
  0xa9   : >> { %v969_v39 = vadd.f32 %v968_v21, %v967_v50  ;;  %v970_v17 = vadd.f32 %v2088_v7, %v962_v24   ;;  %v989_v2 = vrot.slane %v988_v27, 4  ;;  %v1013_v40 = vadd.f32 %v955_v38, %v953_v63 }
  0xaa   : >> { %v978_v0 = vadd.f32 %v977_v26, %v976_v25  ;;  %v983_v37 = vadd.f32 %v982_v32, %v981_v35  ;;  %v996_v5 = vrot.slane %v995_v1, 4  ;;  %v1007_v16 = vrot.slane %v1006_v33, 4 }
  0xab   : >> { %v971_v9 = vadd.f32 %v2084_v6, %v969_v39   ;;  %v990_v36 = vadd.f32 %v989_v2, %v988_v27  ;;  %v1014_v52 = vrot.slane %v1013_v40, 4  ;;  %vm1025_vm0 = vcmask (%p528_p4), 1040384  }
  0xac   : >> { %v984_v11 = vrot.slane %v983_v37, 1  ;;  %v986_v30 = vadd.f32 %v3013_v28, %v978_v0   ;;  %v997_v53 = vadd.f32 %v996_v5, %v995_v1  ;;  %v1008_v19 = vadd.f32 %v1007_v16, %v1006_v33 }
  0xad   : >> { %v991_v4 = vrot.slane %v990_v36, 2  ;;  %v1015_v57 = vadd.f32 %v1014_v52, %v1013_v40  ;;  %v1024_v61 = vrot.slane (%p528_p4), %v971_v9, 7  ;;  %v1028_v44 = vlaneseq (%p528_p4) }
  0xae   : >> { %v985_v23 = vadd.f32 %v984_v11, %v983_v37  ;;  %v998_v47 = vrot.slane %v997_v53, 2  ;;  %v1009_v7 = vrot.slane %v1008_v19, 2  ;;  %v3024_v5 = vmov %v986_v30 }
  0xaf   : >> { %v992_v43 = vadd.f32 %v991_v4, %v990_v36  ;;  %v1016_v48 = vrot.slane %v1015_v57, 2  ;;  %vm1030_vm1 = vcmp.lt.s32.totalorder (%p528_p4), %v1028_v44, 256  ;;  %v2097_v50 = vmov (%p528_p4), 0.0  }
  0xb0   : >> { %v987_v49 = vadd.f32 %v3014_v56, %v985_v23   ;;  %v999_v22 = vadd.f32 %v998_v47, %v997_v53  ;;  %v1010_v54 = vadd.f32 %v1009_v7, %v1008_v19  ;;  %v3026_v7 = vmov %v970_v17  ;;  %1066 = vst [vmem:[%s2316_s15] sm:$0xe0] (%p528_p4), %v2097_v50 }
  0xb1   : >> { %v993_v51 = vrot.slane %v992_v43, 1  ;;  %v1017_v6 = vadd.f32 %v1016_v48, %v1015_v57  ;;  %1067 = vst [vmem:[%s2316_s15 + $0x8] sm:$0xe0] (%p528_p4), %v2097_v50 }
  0xb2   : >> { %v1000_v60 = vrot.slane %v999_v22, 1  ;;  %v1011_v18 = vrot.slane %v1010_v54, 1  ;;  %v3023_v4 = vmov %v987_v49  ;;  %v1036_v42 = vrot.slane (%p528_p4), %v987_v49, 7 }
  0xb3   : >> { %v994_v8 = vadd.f32 %v993_v51, %v992_v43  ;;  %v1018_v31 = vrot.slane %v1017_v6, 1 }
  0xb4   : >> { %v1001_v58 = vadd.f32 %v1000_v60, %v999_v22  ;;  %v1012_v41 = vadd.f32 %v1011_v18, %v1010_v54  ;;  %v1037_v46 = vsel (%p528_p4), %vm1025_vm0, %v986_v30, %v1036_v42 }
  0xb5   : >> { %v1002_v20 = vadd.f32 %v3015_v12, %v994_v8   ;;  %v1019_v59 = vadd.f32 %v1018_v31, %v1017_v6  ;;  %v3025_v6 = vmov %v971_v9  ;;  %530 = sbr.rel (!%p528_p4) target bundleno = 77 (0x4d), region = 175  ;;  %1452 = vst.msk [vmem:[%s2316_s15 + $0x1] ss:$8 sm:$0x3] (%p528_p4), %vm1030_vm1, %v1037_v46 }
  0xb6   : >> { %v1003_v45 = vadd.f32 %v3016_v55, %v1001_v58   ;;  %v1020_v14 = vadd.f32 %v3017_v29, %v1012_v41   ;;  %1454 = vst.msk [vmem:[%s2316_s15 + $0x3] ss:$8 sm:$0x3] (%p528_p4), %vm1030_vm1, %v1037_v46 }
  0xb7   : >> { %v1021_v34 = vadd.f32 %v3018_v62, %v1019_v59   ;;  %v3022_v3 = vmov %v1002_v20 }
  0xb8   : >> { %v3020_v1 = vmov %v1020_v14  ;;  %v3021_v2 = vmov %v1003_v45  ;;  %v1044_v10 = vrot.slane (%p528_p4), %v1003_v45, 7  ;;  %v1026_v3 = vsel (%p528_p4), %vm1025_vm0, %v970_v17, %v1024_v61 }
  0xb9   : >> { %v3019_v0 = vmov %v1021_v34  ;;  %v1060_v63 = vrot.slane (%p528_p4), %v1021_v34, 7  ;;  %1032 = vst.msk [vmem:[%s2316_s15] ss:$8 sm:$0x3] (%p528_p4), %vm1030_vm1, %v1026_v3 }
  0xba   : > { %v1045_v13 = vsel %vm1025_vm0, %v1002_v20, %v1044_v10 }
  0xbb   : > { %v1061_v15 = vsel %vm1025_vm0, %v1020_v14, %v1060_v63  ;;  %1453 = vst.msk [vmem:[%s2316_s15 + $0x2] ss:$8 sm:$0x3] %vm1030_vm1, %v1045_v13 }
  0xbc   : > { %1455 = vst.msk [vmem:[%s2316_s15 + $0x4] ss:$8 sm:$0x3] %vm1030_vm1, %v1061_v15 }
  0xbd   : > { %1953 = shalt.err (!%p1950_p0)
}
  0xbe   : > { %1499 = dma.vmem_to_hbm [thread:$0]  (%p2188_p9), %s1085_s24, 256, %s1087_s2, %s1069_s19  }
  0xbf PF: > { %s3027_s0 = sld [smem:[#allocation19_spill]]  ;;  %p1521_p1 = pnand %p1377_p12, %p2195_p11 }
  0xc0   : > { %s3029_s21 = sld [smem:[#allocation21_spill]] }
  0xc1   : > { %p1522_p2 = pneg %p1521_p1 }
  0xc5   : > { %s1098_s23 = sand.u32 1, %s3027_s0  }
  0xc6   : > { %s1099_s30 = scalar_lea.sflag [#allocation4], %s1098_s23 }
  0xc7   : > { %2031 = dma.done.wait (%p1522_p2), %s1099_s30, 256  }
  0xc8   : > { %2033 = vsyncadd (%p1522_p2), %s1099_s30, 4294967040  ;;  %s31_s26 = sadd.s32 1, %s3029_s21   ;;  %s3030_s1 = sld [smem:[#allocation20_spill]] }
  0xc9   : > { %p28_p3 = scmp.ge.s32.totalorder %s31_s26, 4   ;;  %s3031_s23 = sld [smem:[#allocation23_spill]] }
  0xca   : > { %s3032_s10 = sld [smem:[#allocation22_spill]]  ;;  %s3033_s21 = smov %s2040_s22 }
  0xcb   : > { %s3035_s24 = smov %s2052_s25 }
  0xcc   :  { %30 = sbr.rel (!%p28_p3) target bundleno = 17 (0x11), region = 186 }
  0xce   : > { %s3034_s22 = smov %s3030_s1 }
  0xd0   : > { %s3036_s25 = smov %s3032_s10 }
  0xd1   :  { %1105 = vsyncpa [#allocation3], 1 }
  0xd2   :  { %1107 = vsyncpa [#allocation3 + $0x1], 1 }
  0xd3   :  { %1108 = vsyncpa [#allocation6], 1 }
  0xd4   :  { %1110 = vsyncpa [#allocation6 + $0x1], 1 }
  0xd5   :  { %1111 = vsyncpa [#allocation9], 1 }
  0xd6   :  { %1113 = vsyncpa [#allocation9 + $0x1], 1 }
  0xd7   :  { %1114 = vsyncpa [#allocation12], 1 }
  0xd8   :  { %1116 = vsyncpa [#allocation12 + $0x1], 1 }
  0xd9   :  { %1117 = vsyncpa [#allocation4], 1 }
  0xda   :  { %1119 = vsyncpa [#allocation4 + $0x1], 1 }

</bundles_post_ra>
